<compile_context>
chip_gen: v5e
topology: v5e:2x2
jax: 0.10.0
libtpu: 0.0.40
codegen_flags: <defaults>
</compile_context>

<pallas_src>
import jax
import jax.numpy as jnp
from jax.experimental import pallas as pl
from jax.experimental.pallas import tpu as pltpu

_INNER_MLP_MULT = 2
_BN_EPS = 1e-5  # torch.nn.BatchNorm1d default eps


# ------------------------- in-kernel helpers (traced) ------------------------

def _bn_relu(x, gamma, beta, inv_n):
    """BatchNorm1d training-mode forward (batch stats, biased variance) + ReLU."""
    mu = jnp.sum(x, axis=0, keepdims=True) * inv_n
    d = x - mu
    var = jnp.sum(d * d, axis=0, keepdims=True) * inv_n
    return jnp.maximum(d * jax.lax.rsqrt(var + _BN_EPS) * gamma + beta, 0.0)


def _mlp(x, w1, gb1, w2, gb2, inv_n):
    """Linear(H,2H,no-bias) -> BN -> ReLU -> Linear(2H,H,no-bias) -> BN -> ReLU.
    Weights are bf16 (MXU fast path); accumulation and BN stay f32."""
    h1 = jnp.dot(x.astype(jnp.bfloat16), w1, preferred_element_type=jnp.float32)
    h1 = _bn_relu(h1, gb1[0:1], gb1[1:2], inv_n)
    h2 = jnp.dot(h1.astype(jnp.bfloat16), w2, preferred_element_type=jnp.float32)
    return _bn_relu(h2, gb2[0:1], gb2[1:2], inv_n)


# ------------------------------ fused kernel ---------------------------------

def _make_edge_cycle_kernel(n_cyc_rows, hidden):
    """Build the fused kernel for a fixed tuple of per-cycle-type row counts."""
    K = len(n_cyc_rows)
    H = hidden
    f32, bf16 = jnp.float32, jnp.bfloat16

    def kernel(scal_ref, e_ref, we_ref, be_ref,
               ew1_ref, egb1_ref, ew2_ref, egb2_ref,
               cw1_ref, cgb1_ref, cw2_ref, cgb2_ref,
               *rest):
        # rest = [tec_k, tcc_k, tce_k, crep_k, wc_k, bc_k] * K  ++  outputs
        per_k = rest[:6 * K]
        edge_out_ref = rest[6 * K]
        cyc_out_refs = rest[6 * K + 1:]

        eps_e = scal_ref[0]
        eps_c = scal_ref[1]

        e_f32 = e_ref[...]                     # (NE, H) f32: exact residual
        e_bf = e_f32.astype(bf16)              # cast ONCE for the gather matmul

        we = we_ref[...]                       # (4H, H) bf16 edge linear weight
        cw1, cgb1 = cw1_ref[...], cgb1_ref[...]
        cw2, cgb2 = cw2_ref[...], cgb2_ref[...]

        # Edge-linear bias; per-k cycle->edge contributions broadcast-add onto it.
        edge_acc = be_ref[...]                 # (1, H) f32

        for k in range(K):                     # statically unrolled (K is tiny)
            tec_ref, tcc_ref, tce_ref, crep_ref, wc_ref, bc_ref = per_k[6 * k:6 * k + 6]
            nc = n_cyc_rows[k]
            crep = crep_ref[...]               # (nc, H) f32
            wc = wc_ref[...]                   # (4H, H) bf16

            # ---- edge -> cycle gather: both reduction maps in ONE matmul ----
            a = jnp.dot(tec_ref[...], e_bf, preferred_element_type=f32)   # (2nc, H)
            g1 = jnp.concatenate([a[:nc], a[nc:]], axis=1).astype(bf16)   # (nc, 2H)

            # ---- cycle -> cycle gather fused with cycle Linear(4H->H) ------
            # g2 = [T1_cc@g1 | T2_cc@g1];  e2c = g2 @ Wc + bc
            #     = [T1_cc | T2_cc] @ [g1@Wc[:2H] ; g1@Wc[2H:]] + bc
            u = jnp.concatenate(
                [jnp.dot(g1, wc[:2 * H], preferred_element_type=f32),
                 jnp.dot(g1, wc[2 * H:], preferred_element_type=f32)],
                axis=0).astype(bf16)                                       # (2nc, H)
            e2c = jnp.dot(tcc_ref[...], u, preferred_element_type=f32) + bc_ref[...]

            # ---- cat_channels(e2c, crep) -> cycle -> edge gather fused with
            #      the edge Linear(4H->H), summed over k -----------------------
            cat = jnp.concatenate([e2c, crep], axis=1).astype(bf16)       # (nc, 2H)
            v = jnp.concatenate(
                [jnp.dot(cat, we[:2 * H], preferred_element_type=f32),
                 jnp.dot(cat, we[2 * H:], preferred_element_type=f32)],
                axis=0).astype(bf16)                                       # (2nc, H)
            edge_acc = edge_acc + jnp.dot(tce_ref[...], v,
                                          preferred_element_type=f32)     # (NE, H)

            # ---- cycle MLP with residual (BN over the exact nc rows) -------
            xc = e2c + crep * (1.0 + eps_c)
            cyc_out_refs[k][...] = _mlp(xc, cw1, cgb1, cw2, cgb2, 1.0 / nc)

        # ---- edge residual + edge MLP -----------------------------------------
        xe = edge_acc + e_f32 * (1.0 + eps_e)
        edge_out_ref[...] = _mlp(xe, ew1_ref[...], egb1_ref[...],
                                 ew2_ref[...], egb2_ref[...],
                                 1.0 / e_f32.shape[0])

    return kernel


# ------------------------------- forward -------------------------------------

def edge_cycle_forward(edge_rep, cycle_reps, gmaps, params):
    h = params["hidden_dim"]
    k_types = len(cycle_reps)
    ne = edge_rep.shape[0]
    n_cyc_rows = tuple(int(cr.shape[0]) for cr in cycle_reps)

    # Only the two eps scalars go through SMEM.
    scal = jnp.stack([jnp.asarray(params["edge_eps"], jnp.float32),
                      jnp.asarray(params["cycle_eps"], jnp.float32)])

    fixed_inputs = [
        scal, edge_rep,
        params["edge_lin_w"], params["edge_lin_b"],
        params["edge_mlp"]["w1"], params["edge_mlp"]["gb1"],
        params["edge_mlp"]["w2"], params["edge_mlp"]["gb2"],
        params["cycle_mlp"]["w1"], params["cycle_mlp"]["gb1"],
        params["cycle_mlp"]["w2"], params["cycle_mlp"]["gb2"],
    ]
    per_k_inputs = []
    for k in range(k_types):
        per_k_inputs += [gmaps[k]["tec"], gmaps[k]["tcc"], gmaps[k]["tce"],
                         cycle_reps[k],
                         params["cycle_lin_w"][k], params["cycle_lin_b"][k]]
    inputs = fixed_inputs + per_k_inputs

    vmem = pl.BlockSpec(memory_space=pltpu.MemorySpace.VMEM)
    smem = pl.BlockSpec(memory_space=pltpu.MemorySpace.SMEM)
    in_specs = [smem] + [vmem] * (len(inputs) - 1)

    out_shape = (jax.ShapeDtypeStruct((ne, h), jnp.float32),) + tuple(
        jax.ShapeDtypeStruct((n, h), jnp.float32) for n in n_cyc_rows)
    out_specs = tuple([vmem] * (1 + k_types))

    kernel = _make_edge_cycle_kernel(n_cyc_rows, h)

    outs = pl.pallas_call(
        kernel,
        in_specs=in_specs,
        out_specs=out_specs,
        out_shape=out_shape,
        # Explicit VMEM budget with headroom (v7x physical VMEM is 64 MiB).
        compiler_params=pltpu.CompilerParams(vmem_limit_bytes=32 * 1024 * 1024),
    )(*inputs)

    edge_out = outs[0]
    cycle_outs = list(outs[1:])
    return edge_out, cycle_outs


# -------------------------- parameter construction ---------------------------

def make_params(key, hidden_dim, n_cycle_types=2):
    h, h2 = hidden_dim, hidden_dim * _INNER_MLP_MULT
    ks = jax.random.split(key, 5)

    def lin_bf16(k, din, dout):
        # PyTorch Linear weight (out,in) stored transposed as (in,out), bf16
        # host-side so the MXU gets its native dtype with no in-kernel casts.
        w = jax.random.normal(k, (din, dout), jnp.float32) / jnp.sqrt(din)
        return w.astype(jnp.bfloat16)

    def mlp(k):
        k0, k1 = jax.random.split(k)
        return dict(
            w1=lin_bf16(k0, h, h2),
            gb1=jnp.stack([jnp.ones((h2,), jnp.float32),     # [gamma; beta]
                           jnp.zeros((h2,), jnp.float32)]),
            w2=lin_bf16(k1, h2, h),
            gb2=jnp.stack([jnp.ones((h,), jnp.float32),
                           jnp.zeros((h,), jnp.float32)]),
        )

    kc = jax.random.split(ks[4], n_cycle_types)
    return dict(
        hidden_dim=h,
        edge_mlp=mlp(ks[0]),
        cycle_mlp=mlp(ks[1]),
        edge_lin_w=lin_bf16(ks[2], 4 * h, h),
        edge_lin_b=jnp.zeros((1, h), jnp.float32),
        cycle_lin_w=[lin_bf16(kc[i], 4 * h, h) for i in range(n_cycle_types)],
        cycle_lin_b=[jnp.zeros((1, h), jnp.float32) for _ in range(n_cycle_types)],
        edge_eps=jnp.float32(0.1),
        cycle_eps=jnp.float32(0.1),
    )


def make_gather_maps(key, n_edge, n_cycles):
    """Synthetic 0/1 incidence (transfer) matrices.  The two reduction maps of
    each ptens gather are pre-concatenated host-side so every gather is ONE
    MXU matmul in the kernel; 0/1 values are exact in bf16."""
    maps = []
    for nc in n_cycles:
        key, *ks = jax.random.split(key, 7)

        def bern(k, shape):
            return jax.random.bernoulli(k, 0.3, shape).astype(jnp.float32)

        t1_ec, t2_ec = bern(ks[0], (nc, n_edge)), bern(ks[1], (nc, n_edge))
        t1_cc, t2_cc = bern(ks[2], (nc, nc)), bern(ks[3], (nc, nc))
        t1_ce, t2_ce = bern(ks[4], (n_edge, nc)), bern(ks[5], (n_edge, nc))
        maps.append(dict(
            tec=jnp.concatenate([t1_ec, t2_ec], 0).astype(jnp.bfloat16),  # (2nc, NE)
            tcc=jnp.concatenate([t1_cc, t2_cc], 1).astype(jnp.bfloat16),  # (nc, 2nc)
            tce=jnp.concatenate([t1_ce, t2_ce], 1).astype(jnp.bfloat16),  # (NE, 2nc)
        ))
    return maps


# ---------------------------------- main --------------------------------------

if __name__ == "__main__":
    HIDDEN = 128      # lane-dense channel axis (multiple of 128)
    N_EDGE = 32       # rows of the batched edge ptensor layer
    N_CYC = [10, 12]  # rows of the 5-cycle / 6-cycle ptensor layers

    root = jax.random.PRNGKey(0)
    k_param, k_map, k_e, k_c = jax.random.split(root, 4)

    params = make_params(k_param, HIDDEN, n_cycle_types=len(N_CYC))
    gmaps = make_gather_maps(k_map, N_EDGE, N_CYC)

    edge_rep = jax.random.normal(k_e, (N_EDGE, HIDDEN), jnp.float32)
    kcs = jax.random.split(k_c, len(N_CYC))
    cycle_reps = [jax.random.normal(kcs[i], (N_CYC[i], HIDDEN), jnp.float32)
                  for i in range(len(N_CYC))]

    edge_out, cycle_outs = edge_cycle_forward(edge_rep, cycle_reps, gmaps, params)
    jax.block_until_ready(edge_out)
    for c in cycle_outs:
        jax.block_until_ready(c)

    assert edge_out.shape == (N_EDGE, HIDDEN)
    for c, n in zip(cycle_outs, N_CYC):
        assert c.shape == (n, HIDDEN)
    assert bool(jnp.all(jnp.isfinite(edge_out)))
    print("KERNEL_OK")
</pallas_src>

<mosaic_0001>
module attributes {stable_mosaic.version = 11 : i64} {
  func.func @kernel(%arg0: memref<2xf32, #tpu.memory_space<smem>>, %arg1: memref<32x128xf32, #tpu.memory_space<vmem>>, %arg2: memref<512x128xbf16, #tpu.memory_space<vmem>>, %arg3: memref<1x128xf32, #tpu.memory_space<vmem>>, %arg4: memref<128x256xbf16, #tpu.memory_space<vmem>>, %arg5: memref<2x256xf32, #tpu.memory_space<vmem>>, %arg6: memref<256x128xbf16, #tpu.memory_space<vmem>>, %arg7: memref<2x128xf32, #tpu.memory_space<vmem>>, %arg8: memref<128x256xbf16, #tpu.memory_space<vmem>>, %arg9: memref<2x256xf32, #tpu.memory_space<vmem>>, %arg10: memref<256x128xbf16, #tpu.memory_space<vmem>>, %arg11: memref<2x128xf32, #tpu.memory_space<vmem>>, %arg12: memref<20x32xbf16, #tpu.memory_space<vmem>>, %arg13: memref<10x20xbf16, #tpu.memory_space<vmem>>, %arg14: memref<32x20xbf16, #tpu.memory_space<vmem>>, %arg15: memref<10x128xf32, #tpu.memory_space<vmem>>, %arg16: memref<512x128xbf16, #tpu.memory_space<vmem>>, %arg17: memref<1x128xf32, #tpu.memory_space<vmem>>, %arg18: memref<24x32xbf16, #tpu.memory_space<vmem>>, %arg19: memref<12x24xbf16, #tpu.memory_space<vmem>>, %arg20: memref<32x24xbf16, #tpu.memory_space<vmem>>, %arg21: memref<12x128xf32, #tpu.memory_space<vmem>>, %arg22: memref<512x128xbf16, #tpu.memory_space<vmem>>, %arg23: memref<1x128xf32, #tpu.memory_space<vmem>>, %arg24: memref<32x128xf32, #tpu.memory_space<vmem>>, %arg25: memref<10x128xf32, #tpu.memory_space<vmem>>, %arg26: memref<12x128xf32, #tpu.memory_space<vmem>>) attributes {dimension_semantics = [], scalar_prefetch = 0 : i64, scratch_operands = 0 : i64, tpu.core_type = #tpu.core_type<tc>} {
    %c0 = arith.constant 0 : index
    %0 = memref.load %arg0[%c0] : memref<2xf32, #tpu.memory_space<smem>>
    %c1 = arith.constant 1 : index
    %1 = memref.load %arg0[%c1] : memref<2xf32, #tpu.memory_space<smem>>
    %c0_0 = arith.constant 0 : index
    %c0_1 = arith.constant 0 : index
    %2 = vector.load %arg1[%c0_0, %c0_1] : memref<32x128xf32, #tpu.memory_space<vmem>>, vector<32x128xf32>
    %3 = arith.truncf %2 : vector<32x128xf32> to vector<32x128xbf16>
    %c0_2 = arith.constant 0 : index
    %c0_3 = arith.constant 0 : index
    %4 = vector.load %arg2[%c0_2, %c0_3] : memref<512x128xbf16, #tpu.memory_space<vmem>>, vector<512x128xbf16>
    %c0_4 = arith.constant 0 : index
    %c0_5 = arith.constant 0 : index
    %5 = vector.load %arg8[%c0_4, %c0_5] : memref<128x256xbf16, #tpu.memory_space<vmem>>, vector<128x256xbf16>
    %c0_6 = arith.constant 0 : index
    %c0_7 = arith.constant 0 : index
    %6 = vector.load %arg9[%c0_6, %c0_7] : memref<2x256xf32, #tpu.memory_space<vmem>>, vector<2x256xf32>
    %c0_8 = arith.constant 0 : index
    %c0_9 = arith.constant 0 : index
    %7 = vector.load %arg10[%c0_8, %c0_9] : memref<256x128xbf16, #tpu.memory_space<vmem>>, vector<256x128xbf16>
    %c0_10 = arith.constant 0 : index
    %c0_11 = arith.constant 0 : index
    %8 = vector.load %arg11[%c0_10, %c0_11] : memref<2x128xf32, #tpu.memory_space<vmem>>, vector<2x128xf32>
    %c0_12 = arith.constant 0 : index
    %c0_13 = arith.constant 0 : index
    %9 = vector.load %arg3[%c0_12, %c0_13] : memref<1x128xf32, #tpu.memory_space<vmem>>, vector<1x128xf32>
    %c0_14 = arith.constant 0 : index
    %c0_15 = arith.constant 0 : index
    %10 = vector.load %arg15[%c0_14, %c0_15] : memref<10x128xf32, #tpu.memory_space<vmem>>, vector<10x128xf32>
    %c0_16 = arith.constant 0 : index
    %c0_17 = arith.constant 0 : index
    %11 = vector.load %arg16[%c0_16, %c0_17] : memref<512x128xbf16, #tpu.memory_space<vmem>>, vector<512x128xbf16>
    %c0_18 = arith.constant 0 : index
    %c0_19 = arith.constant 0 : index
    %12 = vector.load %arg12[%c0_18, %c0_19] : memref<20x32xbf16, #tpu.memory_space<vmem>>, vector<20x32xbf16>
    %cst = arith.constant dense<0.000000e+00> : vector<20x128xf32>
    %13 = tpu.matmul %12, %3, %cst {dimension_numbers = #tpu.dot_dimension_numbers<[1], [0], [0], [1], [0, 0, 1, 1], [], []>} : vector<20x32xbf16>, vector<32x128xbf16>, vector<20x128xf32> -> vector<20x128xf32>
    %14 = vector.extract_strided_slice %13 {offsets = [0, 0], sizes = [10, 128], strides = [1, 1]} : vector<20x128xf32> to vector<10x128xf32>
    %15 = vector.extract_strided_slice %13 {offsets = [10, 0], sizes = [10, 128], strides = [1, 1]} : vector<20x128xf32> to vector<10x128xf32>
    %16 = tpu.concatenate %14, %15 in 1 : vector<10x128xf32>, vector<10x128xf32> -> vector<10x256xf32>
    %17 = arith.truncf %16 : vector<10x256xf32> to vector<10x256xbf16>
    %18 = vector.extract_strided_slice %11 {offsets = [0, 0], sizes = [256, 128], strides = [1, 1]} : vector<512x128xbf16> to vector<256x128xbf16>
    %cst_20 = arith.constant dense<0.000000e+00> : vector<10x128xf32>
    %19 = tpu.matmul %17, %18, %cst_20 {dimension_numbers = #tpu.dot_dimension_numbers<[1], [0], [0], [1], [0, 0, 1, 1], [], []>} : vector<10x256xbf16>, vector<256x128xbf16>, vector<10x128xf32> -> vector<10x128xf32>
    %20 = vector.extract_strided_slice %11 {offsets = [256, 0], sizes = [256, 128], strides = [1, 1]} : vector<512x128xbf16> to vector<256x128xbf16>
    %cst_21 = arith.constant dense<0.000000e+00> : vector<10x128xf32>
    %21 = tpu.matmul %17, %20, %cst_21 {dimension_numbers = #tpu.dot_dimension_numbers<[1], [0], [0], [1], [0, 0, 1, 1], [], []>} : vector<10x256xbf16>, vector<256x128xbf16>, vector<10x128xf32> -> vector<10x128xf32>
    %22 = tpu.concatenate %19, %21 in 0 : vector<10x128xf32>, vector<10x128xf32> -> vector<20x128xf32>
    %23 = arith.truncf %22 : vector<20x128xf32> to vector<20x128xbf16>
    %c0_22 = arith.constant 0 : index
    %c0_23 = arith.constant 0 : index
    %24 = vector.load %arg13[%c0_22, %c0_23] : memref<10x20xbf16, #tpu.memory_space<vmem>>, vector<10x20xbf16>
    %cst_24 = arith.constant dense<0.000000e+00> : vector<10x128xf32>
    %25 = tpu.matmul %24, %23, %cst_24 {dimension_numbers = #tpu.dot_dimension_numbers<[1], [0], [0], [1], [0, 0, 1, 1], [], []>} : vector<10x20xbf16>, vector<20x128xbf16>, vector<10x128xf32> -> vector<10x128xf32>
    %c0_25 = arith.constant 0 : index
    %c0_26 = arith.constant 0 : index
    %26 = vector.load %arg17[%c0_25, %c0_26] : memref<1x128xf32, #tpu.memory_space<vmem>>, vector<1x128xf32>
    %27 = vector.broadcast %26 : vector<1x128xf32> to vector<10x128xf32>
    %28 = arith.addf %25, %27 : vector<10x128xf32>
    %29 = tpu.concatenate %28, %10 in 1 : vector<10x128xf32>, vector<10x128xf32> -> vector<10x256xf32>
    %30 = arith.truncf %29 : vector<10x256xf32> to vector<10x256xbf16>
    %31 = vector.extract_strided_slice %4 {offsets = [0, 0], sizes = [256, 128], strides = [1, 1]} : vector<512x128xbf16> to vector<256x128xbf16>
    %cst_27 = arith.constant dense<0.000000e+00> : vector<10x128xf32>
    %32 = tpu.matmul %30, %31, %cst_27 {dimension_numbers = #tpu.dot_dimension_numbers<[1], [0], [0], [1], [0, 0, 1, 1], [], []>} : vector<10x256xbf16>, vector<256x128xbf16>, vector<10x128xf32> -> vector<10x128xf32>
    %33 = vector.extract_strided_slice %4 {offsets = [256, 0], sizes = [256, 128], strides = [1, 1]} : vector<512x128xbf16> to vector<256x128xbf16>
    %cst_28 = arith.constant dense<0.000000e+00> : vector<10x128xf32>
    %34 = tpu.matmul %30, %33, %cst_28 {dimension_numbers = #tpu.dot_dimension_numbers<[1], [0], [0], [1], [0, 0, 1, 1], [], []>} : vector<10x256xbf16>, vector<256x128xbf16>, vector<10x128xf32> -> vector<10x128xf32>
    %35 = tpu.concatenate %32, %34 in 0 : vector<10x128xf32>, vector<10x128xf32> -> vector<20x128xf32>
    %36 = arith.truncf %35 : vector<20x128xf32> to vector<20x128xbf16>
    %c0_29 = arith.constant 0 : index
    %c0_30 = arith.constant 0 : index
    %37 = vector.load %arg14[%c0_29, %c0_30] : memref<32x20xbf16, #tpu.memory_space<vmem>>, vector<32x20xbf16>
    %cst_31 = arith.constant dense<0.000000e+00> : vector<32x128xf32>
    %38 = tpu.matmul %37, %36, %cst_31 {dimension_numbers = #tpu.dot_dimension_numbers<[1], [0], [0], [1], [0, 0, 1, 1], [], []>} : vector<32x20xbf16>, vector<20x128xbf16>, vector<32x128xf32> -> vector<32x128xf32>
    %39 = vector.broadcast %9 : vector<1x128xf32> to vector<32x128xf32>
    %40 = arith.addf %39, %38 : vector<32x128xf32>
    %cst_32 = arith.constant 1.000000e+00 : f32
    %41 = arith.addf %cst_32, %1 : f32
    %42 = vector.broadcast %41 : f32 to vector<10x128xf32>
    %43 = arith.mulf %10, %42 : vector<10x128xf32>
    %44 = arith.addf %28, %43 : vector<10x128xf32>
    %45 = arith.truncf %44 : vector<10x128xf32> to vector<10x128xbf16>
    %cst_33 = arith.constant dense<0.000000e+00> : vector<10x256xf32>
    %46 = tpu.matmul %45, %5, %cst_33 {dimension_numbers = #tpu.dot_dimension_numbers<[1], [0], [0], [1], [0, 0, 1, 1], [], []>} : vector<10x128xbf16>, vector<128x256xbf16>, vector<10x256xf32> -> vector<10x256xf32>
    %47 = vector.extract_strided_slice %6 {offsets = [0, 0], sizes = [1, 256], strides = [1, 1]} : vector<2x256xf32> to vector<1x256xf32>
    %48 = vector.extract_strided_slice %6 {offsets = [1, 0], sizes = [1, 256], strides = [1, 1]} : vector<2x256xf32> to vector<1x256xf32>
    %cst_34 = arith.constant dense<0.000000e+00> : vector<256xf32>
    %49 = vector.multi_reduction <add>, %46, %cst_34 [0] : vector<10x256xf32> to vector<256xf32>
    %50 = vector.shape_cast %49 : vector<256xf32> to vector<1x256xf32>
    %cst_35 = arith.constant 1.000000e-01 : f32
    %51 = vector.broadcast %cst_35 : f32 to vector<1x256xf32>
    %52 = arith.mulf %50, %51 : vector<1x256xf32>
    %53 = vector.broadcast %52 : vector<1x256xf32> to vector<10x256xf32>
    %54 = arith.subf %46, %53 : vector<10x256xf32>
    %55 = arith.mulf %54, %54 : vector<10x256xf32>
    %cst_36 = arith.constant dense<0.000000e+00> : vector<256xf32>
    %56 = vector.multi_reduction <add>, %55, %cst_36 [0] : vector<10x256xf32> to vector<256xf32>
    %57 = vector.shape_cast %56 : vector<256xf32> to vector<1x256xf32>
    %cst_37 = arith.constant 1.000000e-01 : f32
    %58 = vector.broadcast %cst_37 : f32 to vector<1x256xf32>
    %59 = arith.mulf %57, %58 : vector<1x256xf32>
    %cst_38 = arith.constant 9.99999974E-6 : f32
    %60 = vector.broadcast %cst_38 : f32 to vector<1x256xf32>
    %61 = arith.addf %59, %60 : vector<1x256xf32>
    %62 = math.rsqrt %61 : vector<1x256xf32>
    %63 = vector.broadcast %62 : vector<1x256xf32> to vector<10x256xf32>
    %64 = arith.mulf %54, %63 : vector<10x256xf32>
    %65 = vector.broadcast %47 : vector<1x256xf32> to vector<10x256xf32>
    %66 = arith.mulf %64, %65 : vector<10x256xf32>
    %67 = vector.broadcast %48 : vector<1x256xf32> to vector<10x256xf32>
    %68 = arith.addf %66, %67 : vector<10x256xf32>
    %cst_39 = arith.constant 0.000000e+00 : f32
    %69 = vector.broadcast %cst_39 : f32 to vector<10x256xf32>
    %70 = arith.maximumf %68, %69 : vector<10x256xf32>
    %71 = arith.truncf %70 : vector<10x256xf32> to vector<10x256xbf16>
    %cst_40 = arith.constant dense<0.000000e+00> : vector<10x128xf32>
    %72 = tpu.matmul %71, %7, %cst_40 {dimension_numbers = #tpu.dot_dimension_numbers<[1], [0], [0], [1], [0, 0, 1, 1], [], []>} : vector<10x256xbf16>, vector<256x128xbf16>, vector<10x128xf32> -> vector<10x128xf32>
    %73 = vector.extract_strided_slice %8 {offsets = [0, 0], sizes = [1, 128], strides = [1, 1]} : vector<2x128xf32> to vector<1x128xf32>
    %74 = vector.extract_strided_slice %8 {offsets = [1, 0], sizes = [1, 128], strides = [1, 1]} : vector<2x128xf32> to vector<1x128xf32>
    %cst_41 = arith.constant dense<0.000000e+00> : vector<128xf32>
    %75 = vector.multi_reduction <add>, %72, %cst_41 [0] : vector<10x128xf32> to vector<128xf32>
    %76 = vector.shape_cast %75 : vector<128xf32> to vector<1x128xf32>
    %cst_42 = arith.constant 1.000000e-01 : f32
    %77 = vector.broadcast %cst_42 : f32 to vector<1x128xf32>
    %78 = arith.mulf %76, %77 : vector<1x128xf32>
    %79 = vector.broadcast %78 : vector<1x128xf32> to vector<10x128xf32>
    %80 = arith.subf %72, %79 : vector<10x128xf32>
    %81 = arith.mulf %80, %80 : vector<10x128xf32>
    %cst_43 = arith.constant dense<0.000000e+00> : vector<128xf32>
    %82 = vector.multi_reduction <add>, %81, %cst_43 [0] : vector<10x128xf32> to vector<128xf32>
    %83 = vector.shape_cast %82 : vector<128xf32> to vector<1x128xf32>
    %cst_44 = arith.constant 1.000000e-01 : f32
    %84 = vector.broadcast %cst_44 : f32 to vector<1x128xf32>
    %85 = arith.mulf %83, %84 : vector<1x128xf32>
    %cst_45 = arith.constant 9.99999974E-6 : f32
    %86 = vector.broadcast %cst_45 : f32 to vector<1x128xf32>
    %87 = arith.addf %85, %86 : vector<1x128xf32>
    %88 = math.rsqrt %87 : vector<1x128xf32>
    %89 = vector.broadcast %88 : vector<1x128xf32> to vector<10x128xf32>
    %90 = arith.mulf %80, %89 : vector<10x128xf32>
    %91 = vector.broadcast %73 : vector<1x128xf32> to vector<10x128xf32>
    %92 = arith.mulf %90, %91 : vector<10x128xf32>
    %93 = vector.broadcast %74 : vector<1x128xf32> to vector<10x128xf32>
    %94 = arith.addf %92, %93 : vector<10x128xf32>
    %cst_46 = arith.constant 0.000000e+00 : f32
    %95 = vector.broadcast %cst_46 : f32 to vector<10x128xf32>
    %96 = arith.maximumf %94, %95 : vector<10x128xf32>
    %c0_47 = arith.constant 0 : index
    %c0_48 = arith.constant 0 : index
    %97 = vector.load %arg25[%c0_47, %c0_48] : memref<10x128xf32, #tpu.memory_space<vmem>>, vector<10x128xf32>
    tpu.vector_store %arg25[%c0_47, %c0_48], %96 {strides = array<i32>} : memref<10x128xf32, #tpu.memory_space<vmem>>, vector<10x128xf32>,
    %c0_49 = arith.constant 0 : index
    %c0_50 = arith.constant 0 : index
    %98 = vector.load %arg21[%c0_49, %c0_50] : memref<12x128xf32, #tpu.memory_space<vmem>>, vector<12x128xf32>
    %c0_51 = arith.constant 0 : index
    %c0_52 = arith.constant 0 : index
    %99 = vector.load %arg22[%c0_51, %c0_52] : memref<512x128xbf16, #tpu.memory_space<vmem>>, vector<512x128xbf16>
    %c0_53 = arith.constant 0 : index
    %c0_54 = arith.constant 0 : index
    %100 = vector.load %arg18[%c0_53, %c0_54] : memref<24x32xbf16, #tpu.memory_space<vmem>>, vector<24x32xbf16>
    %cst_55 = arith.constant dense<0.000000e+00> : vector<24x128xf32>
    %101 = tpu.matmul %100, %3, %cst_55 {dimension_numbers = #tpu.dot_dimension_numbers<[1], [0], [0], [1], [0, 0, 1, 1], [], []>} : vector<24x32xbf16>, vector<32x128xbf16>, vector<24x128xf32> -> vector<24x128xf32>
    %102 = vector.extract_strided_slice %101 {offsets = [0, 0], sizes = [12, 128], strides = [1, 1]} : vector<24x128xf32> to vector<12x128xf32>
    %103 = vector.extract_strided_slice %101 {offsets = [12, 0], sizes = [12, 128], strides = [1, 1]} : vector<24x128xf32> to vector<12x128xf32>
    %104 = tpu.concatenate %102, %103 in 1 : vector<12x128xf32>, vector<12x128xf32> -> vector<12x256xf32>
    %105 = arith.truncf %104 : vector<12x256xf32> to vector<12x256xbf16>
    %106 = vector.extract_strided_slice %99 {offsets = [0, 0], sizes = [256, 128], strides = [1, 1]} : vector<512x128xbf16> to vector<256x128xbf16>
    %cst_56 = arith.constant dense<0.000000e+00> : vector<12x128xf32>
    %107 = tpu.matmul %105, %106, %cst_56 {dimension_numbers = #tpu.dot_dimension_numbers<[1], [0], [0], [1], [0, 0, 1, 1], [], []>} : vector<12x256xbf16>, vector<256x128xbf16>, vector<12x128xf32> -> vector<12x128xf32>
    %108 = vector.extract_strided_slice %99 {offsets = [256, 0], sizes = [256, 128], strides = [1, 1]} : vector<512x128xbf16> to vector<256x128xbf16>
    %cst_57 = arith.constant dense<0.000000e+00> : vector<12x128xf32>
    %109 = tpu.matmul %105, %108, %cst_57 {dimension_numbers = #tpu.dot_dimension_numbers<[1], [0], [0], [1], [0, 0, 1, 1], [], []>} : vector<12x256xbf16>, vector<256x128xbf16>, vector<12x128xf32> -> vector<12x128xf32>
    %110 = tpu.concatenate %107, %109 in 0 : vector<12x128xf32>, vector<12x128xf32> -> vector<24x128xf32>
    %111 = arith.truncf %110 : vector<24x128xf32> to vector<24x128xbf16>
    %c0_58 = arith.constant 0 : index
    %c0_59 = arith.constant 0 : index
    %112 = vector.load %arg19[%c0_58, %c0_59] : memref<12x24xbf16, #tpu.memory_space<vmem>>, vector<12x24xbf16>
    %cst_60 = arith.constant dense<0.000000e+00> : vector<12x128xf32>
    %113 = tpu.matmul %112, %111, %cst_60 {dimension_numbers = #tpu.dot_dimension_numbers<[1], [0], [0], [1], [0, 0, 1, 1], [], []>} : vector<12x24xbf16>, vector<24x128xbf16>, vector<12x128xf32> -> vector<12x128xf32>
    %c0_61 = arith.constant 0 : index
    %c0_62 = arith.constant 0 : index
    %114 = vector.load %arg23[%c0_61, %c0_62] : memref<1x128xf32, #tpu.memory_space<vmem>>, vector<1x128xf32>
    %115 = vector.broadcast %114 : vector<1x128xf32> to vector<12x128xf32>
    %116 = arith.addf %113, %115 : vector<12x128xf32>
    %117 = tpu.concatenate %116, %98 in 1 : vector<12x128xf32>, vector<12x128xf32> -> vector<12x256xf32>
    %118 = arith.truncf %117 : vector<12x256xf32> to vector<12x256xbf16>
    %119 = vector.extract_strided_slice %4 {offsets = [0, 0], sizes = [256, 128], strides = [1, 1]} : vector<512x128xbf16> to vector<256x128xbf16>
    %cst_63 = arith.constant dense<0.000000e+00> : vector<12x128xf32>
    %120 = tpu.matmul %118, %119, %cst_63 {dimension_numbers = #tpu.dot_dimension_numbers<[1], [0], [0], [1], [0, 0, 1, 1], [], []>} : vector<12x256xbf16>, vector<256x128xbf16>, vector<12x128xf32> -> vector<12x128xf32>
    %121 = vector.extract_strided_slice %4 {offsets = [256, 0], sizes = [256, 128], strides = [1, 1]} : vector<512x128xbf16> to vector<256x128xbf16>
    %cst_64 = arith.constant dense<0.000000e+00> : vector<12x128xf32>
    %122 = tpu.matmul %118, %121, %cst_64 {dimension_numbers = #tpu.dot_dimension_numbers<[1], [0], [0], [1], [0, 0, 1, 1], [], []>} : vector<12x256xbf16>, vector<256x128xbf16>, vector<12x128xf32> -> vector<12x128xf32>
    %123 = tpu.concatenate %120, %122 in 0 : vector<12x128xf32>, vector<12x128xf32> -> vector<24x128xf32>
    %124 = arith.truncf %123 : vector<24x128xf32> to vector<24x128xbf16>
    %c0_65 = arith.constant 0 : index
    %c0_66 = arith.constant 0 : index
    %125 = vector.load %arg20[%c0_65, %c0_66] : memref<32x24xbf16, #tpu.memory_space<vmem>>, vector<32x24xbf16>
    %cst_67 = arith.constant dense<0.000000e+00> : vector<32x128xf32>
    %126 = tpu.matmul %125, %124, %cst_67 {dimension_numbers = #tpu.dot_dimension_numbers<[1], [0], [0], [1], [0, 0, 1, 1], [], []>} : vector<32x24xbf16>, vector<24x128xbf16>, vector<32x128xf32> -> vector<32x128xf32>
    %127 = arith.addf %40, %126 : vector<32x128xf32>
    %cst_68 = arith.constant 1.000000e+00 : f32
    %128 = arith.addf %cst_68, %1 : f32
    %129 = vector.broadcast %128 : f32 to vector<12x128xf32>
    %130 = arith.mulf %98, %129 : vector<12x128xf32>
    %131 = arith.addf %116, %130 : vector<12x128xf32>
    %132 = arith.truncf %131 : vector<12x128xf32> to vector<12x128xbf16>
    %cst_69 = arith.constant dense<0.000000e+00> : vector<12x256xf32>
    %133 = tpu.matmul %132, %5, %cst_69 {dimension_numbers = #tpu.dot_dimension_numbers<[1], [0], [0], [1], [0, 0, 1, 1], [], []>} : vector<12x128xbf16>, vector<128x256xbf16>, vector<12x256xf32> -> vector<12x256xf32>
    %134 = vector.extract_strided_slice %6 {offsets = [0, 0], sizes = [1, 256], strides = [1, 1]} : vector<2x256xf32> to vector<1x256xf32>
    %135 = vector.extract_strided_slice %6 {offsets = [1, 0], sizes = [1, 256], strides = [1, 1]} : vector<2x256xf32> to vector<1x256xf32>
    %cst_70 = arith.constant dense<0.000000e+00> : vector<256xf32>
    %136 = vector.multi_reduction <add>, %133, %cst_70 [0] : vector<12x256xf32> to vector<256xf32>
    %137 = vector.shape_cast %136 : vector<256xf32> to vector<1x256xf32>
    %cst_71 = arith.constant 0.0833333358 : f32
    %138 = vector.broadcast %cst_71 : f32 to vector<1x256xf32>
    %139 = arith.mulf %137, %138 : vector<1x256xf32>
    %140 = vector.broadcast %139 : vector<1x256xf32> to vector<12x256xf32>
    %141 = arith.subf %133, %140 : vector<12x256xf32>
    %142 = arith.mulf %141, %141 : vector<12x256xf32>
    %cst_72 = arith.constant dense<0.000000e+00> : vector<256xf32>
    %143 = vector.multi_reduction <add>, %142, %cst_72 [0] : vector<12x256xf32> to vector<256xf32>
    %144 = vector.shape_cast %143 : vector<256xf32> to vector<1x256xf32>
    %cst_73 = arith.constant 0.0833333358 : f32
    %145 = vector.broadcast %cst_73 : f32 to vector<1x256xf32>
    %146 = arith.mulf %144, %145 : vector<1x256xf32>
    %cst_74 = arith.constant 9.99999974E-6 : f32
    %147 = vector.broadcast %cst_74 : f32 to vector<1x256xf32>
    %148 = arith.addf %146, %147 : vector<1x256xf32>
    %149 = math.rsqrt %148 : vector<1x256xf32>
    %150 = vector.broadcast %149 : vector<1x256xf32> to vector<12x256xf32>
    %151 = arith.mulf %141, %150 : vector<12x256xf32>
    %152 = vector.broadcast %134 : vector<1x256xf32> to vector<12x256xf32>
    %153 = arith.mulf %151, %152 : vector<12x256xf32>
    %154 = vector.broadcast %135 : vector<1x256xf32> to vector<12x256xf32>
    %155 = arith.addf %153, %154 : vector<12x256xf32>
    %cst_75 = arith.constant 0.000000e+00 : f32
    %156 = vector.broadcast %cst_75 : f32 to vector<12x256xf32>
    %157 = arith.maximumf %155, %156 : vector<12x256xf32>
    %158 = arith.truncf %157 : vector<12x256xf32> to vector<12x256xbf16>
    %cst_76 = arith.constant dense<0.000000e+00> : vector<12x128xf32>
    %159 = tpu.matmul %158, %7, %cst_76 {dimension_numbers = #tpu.dot_dimension_numbers<[1], [0], [0], [1], [0, 0, 1, 1], [], []>} : vector<12x256xbf16>, vector<256x128xbf16>, vector<12x128xf32> -> vector<12x128xf32>
    %160 = vector.extract_strided_slice %8 {offsets = [0, 0], sizes = [1, 128], strides = [1, 1]} : vector<2x128xf32> to vector<1x128xf32>
    %161 = vector.extract_strided_slice %8 {offsets = [1, 0], sizes = [1, 128], strides = [1, 1]} : vector<2x128xf32> to vector<1x128xf32>
    %cst_77 = arith.constant dense<0.000000e+00> : vector<128xf32>
    %162 = vector.multi_reduction <add>, %159, %cst_77 [0] : vector<12x128xf32> to vector<128xf32>
    %163 = vector.shape_cast %162 : vector<128xf32> to vector<1x128xf32>
    %cst_78 = arith.constant 0.0833333358 : f32
    %164 = vector.broadcast %cst_78 : f32 to vector<1x128xf32>
    %165 = arith.mulf %163, %164 : vector<1x128xf32>
    %166 = vector.broadcast %165 : vector<1x128xf32> to vector<12x128xf32>
    %167 = arith.subf %159, %166 : vector<12x128xf32>
    %168 = arith.mulf %167, %167 : vector<12x128xf32>
    %cst_79 = arith.constant dense<0.000000e+00> : vector<128xf32>
    %169 = vector.multi_reduction <add>, %168, %cst_79 [0] : vector<12x128xf32> to vector<128xf32>
    %170 = vector.shape_cast %169 : vector<128xf32> to vector<1x128xf32>
    %cst_80 = arith.constant 0.0833333358 : f32
    %171 = vector.broadcast %cst_80 : f32 to vector<1x128xf32>
    %172 = arith.mulf %170, %171 : vector<1x128xf32>
    %cst_81 = arith.constant 9.99999974E-6 : f32
    %173 = vector.broadcast %cst_81 : f32 to vector<1x128xf32>
    %174 = arith.addf %172, %173 : vector<1x128xf32>
    %175 = math.rsqrt %174 : vector<1x128xf32>
    %176 = vector.broadcast %175 : vector<1x128xf32> to vector<12x128xf32>
    %177 = arith.mulf %167, %176 : vector<12x128xf32>
    %178 = vector.broadcast %160 : vector<1x128xf32> to vector<12x128xf32>
    %179 = arith.mulf %177, %178 : vector<12x128xf32>
    %180 = vector.broadcast %161 : vector<1x128xf32> to vector<12x128xf32>
    %181 = arith.addf %179, %180 : vector<12x128xf32>
    %cst_82 = arith.constant 0.000000e+00 : f32
    %182 = vector.broadcast %cst_82 : f32 to vector<12x128xf32>
    %183 = arith.maximumf %181, %182 : vector<12x128xf32>
    %c0_83 = arith.constant 0 : index
    %c0_84 = arith.constant 0 : index
    %184 = vector.load %arg26[%c0_83, %c0_84] : memref<12x128xf32, #tpu.memory_space<vmem>>, vector<12x128xf32>
    tpu.vector_store %arg26[%c0_83, %c0_84], %183 {strides = array<i32>} : memref<12x128xf32, #tpu.memory_space<vmem>>, vector<12x128xf32>,
    %cst_85 = arith.constant 1.000000e+00 : f32
    %185 = arith.addf %cst_85, %0 : f32
    %186 = vector.broadcast %185 : f32 to vector<32x128xf32>
    %187 = arith.mulf %2, %186 : vector<32x128xf32>
    %188 = arith.addf %127, %187 : vector<32x128xf32>
    %c0_86 = arith.constant 0 : index
    %c0_87 = arith.constant 0 : index
    %189 = vector.load %arg4[%c0_86, %c0_87] : memref<128x256xbf16, #tpu.memory_space<vmem>>, vector<128x256xbf16>
    %c0_88 = arith.constant 0 : index
    %c0_89 = arith.constant 0 : index
    %190 = vector.load %arg5[%c0_88, %c0_89] : memref<2x256xf32, #tpu.memory_space<vmem>>, vector<2x256xf32>
    %c0_90 = arith.constant 0 : index
    %c0_91 = arith.constant 0 : index
    %191 = vector.load %arg6[%c0_90, %c0_91] : memref<256x128xbf16, #tpu.memory_space<vmem>>, vector<256x128xbf16>
    %c0_92 = arith.constant 0 : index
    %c0_93 = arith.constant 0 : index
    %192 = vector.load %arg7[%c0_92, %c0_93] : memref<2x128xf32, #tpu.memory_space<vmem>>, vector<2x128xf32>
    %193 = arith.truncf %188 : vector<32x128xf32> to vector<32x128xbf16>
    %cst_94 = arith.constant dense<0.000000e+00> : vector<32x256xf32>
    %194 = tpu.matmul %193, %189, %cst_94 {dimension_numbers = #tpu.dot_dimension_numbers<[1], [0], [0], [1], [0, 0, 1, 1], [], []>} : vector<32x128xbf16>, vector<128x256xbf16>, vector<32x256xf32> -> vector<32x256xf32>
    %195 = vector.extract_strided_slice %190 {offsets = [0, 0], sizes = [1, 256], strides = [1, 1]} : vector<2x256xf32> to vector<1x256xf32>
    %196 = vector.extract_strided_slice %190 {offsets = [1, 0], sizes = [1, 256], strides = [1, 1]} : vector<2x256xf32> to vector<1x256xf32>
    %cst_95 = arith.constant dense<0.000000e+00> : vector<256xf32>
    %197 = vector.multi_reduction <add>, %194, %cst_95 [0] : vector<32x256xf32> to vector<256xf32>
    %198 = vector.shape_cast %197 : vector<256xf32> to vector<1x256xf32>
    %cst_96 = arith.constant 3.125000e-02 : f32
    %199 = vector.broadcast %cst_96 : f32 to vector<1x256xf32>
    %200 = arith.mulf %198, %199 : vector<1x256xf32>
    %201 = vector.broadcast %200 : vector<1x256xf32> to vector<32x256xf32>
    %202 = arith.subf %194, %201 : vector<32x256xf32>
    %203 = arith.mulf %202, %202 : vector<32x256xf32>
    %cst_97 = arith.constant dense<0.000000e+00> : vector<256xf32>
    %204 = vector.multi_reduction <add>, %203, %cst_97 [0] : vector<32x256xf32> to vector<256xf32>
    %205 = vector.shape_cast %204 : vector<256xf32> to vector<1x256xf32>
    %cst_98 = arith.constant 3.125000e-02 : f32
    %206 = vector.broadcast %cst_98 : f32 to vector<1x256xf32>
    %207 = arith.mulf %205, %206 : vector<1x256xf32>
    %cst_99 = arith.constant 9.99999974E-6 : f32
    %208 = vector.broadcast %cst_99 : f32 to vector<1x256xf32>
    %209 = arith.addf %207, %208 : vector<1x256xf32>
    %210 = math.rsqrt %209 : vector<1x256xf32>
    %211 = vector.broadcast %210 : vector<1x256xf32> to vector<32x256xf32>
    %212 = arith.mulf %202, %211 : vector<32x256xf32>
    %213 = vector.broadcast %195 : vector<1x256xf32> to vector<32x256xf32>
    %214 = arith.mulf %212, %213 : vector<32x256xf32>
    %215 = vector.broadcast %196 : vector<1x256xf32> to vector<32x256xf32>
    %216 = arith.addf %214, %215 : vector<32x256xf32>
    %cst_100 = arith.constant 0.000000e+00 : f32
    %217 = vector.broadcast %cst_100 : f32 to vector<32x256xf32>
    %218 = arith.maximumf %216, %217 : vector<32x256xf32>
    %219 = arith.truncf %218 : vector<32x256xf32> to vector<32x256xbf16>
    %cst_101 = arith.constant dense<0.000000e+00> : vector<32x128xf32>
    %220 = tpu.matmul %219, %191, %cst_101 {dimension_numbers = #tpu.dot_dimension_numbers<[1], [0], [0], [1], [0, 0, 1, 1], [], []>} : vector<32x256xbf16>, vector<256x128xbf16>, vector<32x128xf32> -> vector<32x128xf32>
    %221 = vector.extract_strided_slice %192 {offsets = [0, 0], sizes = [1, 128], strides = [1, 1]} : vector<2x128xf32> to vector<1x128xf32>
    %222 = vector.extract_strided_slice %192 {offsets = [1, 0], sizes = [1, 128], strides = [1, 1]} : vector<2x128xf32> to vector<1x128xf32>
    %cst_102 = arith.constant dense<0.000000e+00> : vector<128xf32>
    %223 = vector.multi_reduction <add>, %220, %cst_102 [0] : vector<32x128xf32> to vector<128xf32>
    %224 = vector.shape_cast %223 : vector<128xf32> to vector<1x128xf32>
    %cst_103 = arith.constant 3.125000e-02 : f32
    %225 = vector.broadcast %cst_103 : f32 to vector<1x128xf32>
    %226 = arith.mulf %224, %225 : vector<1x128xf32>
    %227 = vector.broadcast %226 : vector<1x128xf32> to vector<32x128xf32>
    %228 = arith.subf %220, %227 : vector<32x128xf32>
    %229 = arith.mulf %228, %228 : vector<32x128xf32>
    %cst_104 = arith.constant dense<0.000000e+00> : vector<128xf32>
    %230 = vector.multi_reduction <add>, %229, %cst_104 [0] : vector<32x128xf32> to vector<128xf32>
    %231 = vector.shape_cast %230 : vector<128xf32> to vector<1x128xf32>
    %cst_105 = arith.constant 3.125000e-02 : f32
    %232 = vector.broadcast %cst_105 : f32 to vector<1x128xf32>
    %233 = arith.mulf %231, %232 : vector<1x128xf32>
    %cst_106 = arith.constant 9.99999974E-6 : f32
    %234 = vector.broadcast %cst_106 : f32 to vector<1x128xf32>
    %235 = arith.addf %233, %234 : vector<1x128xf32>
    %236 = math.rsqrt %235 : vector<1x128xf32>
    %237 = vector.broadcast %236 : vector<1x128xf32> to vector<32x128xf32>
    %238 = arith.mulf %228, %237 : vector<32x128xf32>
    %239 = vector.broadcast %221 : vector<1x128xf32> to vector<32x128xf32>
    %240 = arith.mulf %238, %239 : vector<32x128xf32>
    %241 = vector.broadcast %222 : vector<1x128xf32> to vector<32x128xf32>
    %242 = arith.addf %240, %241 : vector<32x128xf32>
    %cst_107 = arith.constant 0.000000e+00 : f32
    %243 = vector.broadcast %cst_107 : f32 to vector<32x128xf32>
    %244 = arith.maximumf %242, %243 : vector<32x128xf32>
    %c0_108 = arith.constant 0 : index
    %c0_109 = arith.constant 0 : index
    %245 = vector.load %arg24[%c0_108, %c0_109] : memref<32x128xf32, #tpu.memory_space<vmem>>, vector<32x128xf32>
    tpu.vector_store %arg24[%c0_108, %c0_109], %244 {strides = array<i32>} : memref<32x128xf32, #tpu.memory_space<vmem>>, vector<32x128xf32>,
    return
  }
}

</mosaic_0001>

<bundles_post_ra>
// kernel: tpu_custom_call.1
= control target key start
LH: loop header
LB: loop body
LE: loop exit
PB: predicated region body
PF: predicated region fallthrough
CT: control target
= control target key end

     0   :  { %s4996_s0 = inlined_call_operand.hbm [shape: f32[2], index: 0, kind: input, shape index: {}]   ;;  %s4997_s1 = inlined_call_operand.vmem [shape: f32[32,128], index: 1, kind: input, shape index: {}]   ;;  %s4998_s2 = inlined_call_operand.hbm [shape: bf16[512,128], index: 2, kind: input, shape index: {}]   ;;  %s4999_s3 = inlined_call_operand.vmem [shape: f32[1,128], index: 3, kind: input, shape index: {}]   ;;  %s5000_s4 = inlined_call_operand.hbm [shape: bf16[128,256], index: 4, kind: input, shape index: {}]   ;;  %s5001_s5 = inlined_call_operand.hbm [shape: f32[2,256], index: 5, kind: input, shape index: {}]   ;;  %s5002_s6 = inlined_call_operand.hbm [shape: bf16[256,128], index: 6, kind: input, shape index: {}]   ;;  %s5003_s7 = inlined_call_operand.hbm [shape: f32[2,128], index: 7, kind: input, shape index: {}]   ;;  %s5004_s8 = inlined_call_operand.hbm [shape: bf16[128,256], index: 8, kind: input, shape index: {}]   ;;  %s5005_s9 = inlined_call_operand.hbm [shape: f32[2,256], index: 9, kind: input, shape index: {}]   ;;  %s5006_s10 = inlined_call_operand.hbm [shape: bf16[256,128], index: 10, kind: input, shape index: {}]   ;;  %s5007_s11 = inlined_call_operand.hbm [shape: f32[2,128], index: 11, kind: input, shape index: {}]   ;;  %s5008_s12 = inlined_call_operand.vmem [shape: bf16[20,32], index: 12, kind: input, shape index: {}]   ;;  %s5009_s13 = inlined_call_operand.hbm [shape: bf16[10,20], index: 13, kind: input, shape index: {}]   ;;  %s5010_s14 = inlined_call_operand.vmem [shape: bf16[32,20], index: 14, kind: input, shape index: {}]   ;;  %s5011_s15 = inlined_call_operand.hbm [shape: f32[10,128], index: 15, kind: input, shape index: {}]   ;;  %s5012_s16 = inlined_call_operand.hbm [shape: bf16[512,128], index: 16, kind: input, shape index: {}]   ;;  %s5013_s17 = inlined_call_operand.vmem [shape: f32[1,128], index: 17, kind: input, shape index: {}]   ;;  %s5014_s18 = inlined_call_operand.hbm [shape: bf16[24,32], index: 18, kind: input, shape index: {}]   ;;  %s5015_s19 = inlined_call_operand.hbm [shape: bf16[12,24], index: 19, kind: input, shape index: {}]   ;;  %s5016_s20 = inlined_call_operand.vmem [shape: bf16[32,24], index: 20, kind: input, shape index: {}]   ;;  %s5017_s21 = inlined_call_operand.hbm [shape: f32[12,128], index: 21, kind: input, shape index: {}]   ;;  %s5018_s22 = inlined_call_operand.hbm [shape: bf16[512,128], index: 22, kind: input, shape index: {}]   ;;  %s5019_s23 = inlined_call_operand.vmem [shape: f32[1,128], index: 23, kind: input, shape index: {}]   ;;  %s5020_s24 = inlined_call_operand.hbm [shape: f32[32,128], index: 24, kind: output, shape index: {0}]   ;;  %s5021_s25 = inlined_call_operand.hbm [shape: f32[10,128], index: 25, kind: output, shape index: {1}]   ;;  %s5022_s26 = inlined_call_operand.hbm [shape: f32[12,128], index: 26, kind: output, shape index: {2}]  }
   0x1   :  { %5053 = sst [smem:[#allocation72_spill]] %s4996_s0 }
   0x2   :  { %5054 = sst [smem:[#allocation73_spill]] %s4997_s1 }
   0x3   :  { %5055 = sst [smem:[#allocation74_spill]] %s4998_s2 }
   0x4   :  { %5056 = sst [smem:[#allocation75_spill]] %s4999_s3 }
   0x5   :  { %5057 = sst [smem:[#allocation76_spill]] %s5000_s4 }
   0x6   :  { %5058 = sst [smem:[#allocation77_spill]] %s5001_s5 }
   0x7   :  { %5059 = sst [smem:[#allocation78_spill]] %s5002_s6 }
   0x8   :  { %5060 = sst [smem:[#allocation79_spill]] %s5003_s7 }
   0x9   :  { %5061 = sst [smem:[#allocation80_spill]] %s5004_s8 }
   0xa   :  { %5062 = sst [smem:[#allocation81_spill]] %s5005_s9 }
   0xb   :  { %5063 = sst [smem:[#allocation82_spill]] %s5006_s10 }
   0xc   :  { %5064 = sst [smem:[#allocation83_spill]] %s5020_s24 }
   0xd   :  { %5065 = sst [smem:[#allocation84_spill]] %s5021_s25 }
   0xe   :  { %5066 = sst [smem:[#allocation85_spill]] %s5022_s26 }
   0xf   :  { %32 = vsyncpa [#allocation5], 0 }
  0x10   :  { %33 = vsyncpa [#allocation3], 0 }
  0x11   :  { %34 = vsyncpa [#allocation8], 0 }
  0x12   :  { %35 = vsyncpa [#allocation11], 0 }
  0x13   :  { %36 = vsyncpa [#allocation14], 0 }
  0x14   :  { %37 = vsyncpa [#allocation17], 0 }
  0x15   :  { %38 = vsyncpa [#allocation20], 0 }
  0x16   :  { %39 = vsyncpa [#allocation23], 0 }
  0x17   :  { %40 = vsyncpa [#allocation26], 0 }
  0x18   :  { %41 = vsyncpa [#allocation29], 0 }
  0x19   :  { %42 = vsyncpa [#allocation4], 0  ;;  %s5067_s7 = sld [smem:[#allocation76_spill]] }
  0x1f   :  { %s74_s28 = sshll.u32 %s5067_s7, 4  ;;  %s75_s28 = int_to_ptr.hbm [resolvable:$true] %s74_s28 }
  0x20   :  { %43 = vsyncpa [#allocation32], 0  ;;  %s4213_s8 = smov [#allocation7]   ;;  %s5024_s29 = smov 128  }
  0x21   :  { %s76_s4 = sshll.u32 %s4213_s8, 4  ;;  %s4215_s0 = smov 8   ;;  %s77_s4 = int_to_ptr.vmem [resolvable:$true] %s76_s4 }
  0x22   :  { %82 = dma.hbm_to_vmem [thread:$0]  %s75_s28, 2048, %s77_s4, [#allocation8], %s5024_s29, %s5024_s29, %s4215_s0  }
  0x23   :  { %s5068_s2 = sld [smem:[#allocation78_spill]]  ;;  %s4216_s10 = smov [#allocation10]  }
  0x24   :  { %s100_s6 = sshll.u32 %s4216_s10, 4  ;;  %s5069_s3 = sld [smem:[#allocation80_spill]]  ;;  %s101_s6 = int_to_ptr.vmem [resolvable:$true] %s100_s6 }
  0x25   :  { %s4217_s8 = smov 64   ;;  %s4218_s24 = smov 4  }
  0x26   :  { %s5070_s29 = sld [smem:[#allocation82_spill]]  ;;  %s4219_s30 = smov [#allocation13]  }
  0x27   :  { %s5071_s10 = smov 128   ;;  %s4220_s1 = smov [#allocation16]  }
  0x28   :  { %s148_s27 = sshll.u32 %s4220_s1, 4  ;;  %s172_s25 = sshll.u32 %s5009_s13, 4  ;;  %s149_s27 = int_to_ptr.vmem [resolvable:$true] %s148_s27  ;;  %s173_s25 = int_to_ptr.hbm [resolvable:$true] %s172_s25 }
  0x29   :  { %s98_s5 = sshll.u32 %s5068_s2, 4  ;;  %s124_s2 = sshll.u32 %s4219_s30, 4  ;;  %s99_s5 = int_to_ptr.hbm [resolvable:$true] %s98_s5  ;;  %s125_s2 = int_to_ptr.vmem [resolvable:$true] %s124_s2 }
  0x2a   :  { %s122_s7 = sshll.u32 %s5069_s3, 4  ;;  %s4221_s28 = smov [#allocation19]   ;;  %s123_s7 = int_to_ptr.hbm [resolvable:$true] %s122_s7 }
  0x2b   :  { %106 = dma.hbm_to_vmem [thread:$0]  %s99_s5, 2048, %s101_s6, [#allocation11], %s4217_s8, %s4217_s8, %s4218_s24  }
  0x2c   :  { %s146_s9 = sshll.u32 %s5070_s29, 4  ;;  %s200_s6 = sshll.u32 %s5012_s16, 4  ;;  %s147_s9 = int_to_ptr.hbm [resolvable:$true] %s146_s9  ;;  %s201_s6 = int_to_ptr.hbm [resolvable:$true] %s200_s6 }
  0x2d   :  { %130 = dma.hbm_to_vmem [thread:$0]  %s123_s7, 2048, %s125_s2, [#allocation14], %s5071_s10, %s5071_s10, %s4215_s0  }
  0x2e   :  { %154 = dma.hbm_to_vmem [thread:$0]  %s147_s9, 2048, %s149_s27, [#allocation17], %s4217_s8, %s4217_s8, %s4218_s24  }
  0x2f   :  { %s174_s4 = sshll.u32 %s4221_s28, 4  ;;  %s4222_s26 = smov [#allocation22]   ;;  %s175_s4 = int_to_ptr.vmem [resolvable:$true] %s174_s4 }
  0x30   :  { %180 = dma.hbm_to_vmem [thread:$0]  %s173_s25, 128, %s175_s4, [#allocation20], %s4217_s8, %s4217_s8, %s4218_s24  }
  0x31   :  { %s202_s13 = sshll.u32 %s4222_s26, 4  ;;  %s228_s2 = sshll.u32 %s5015_s19, 4  ;;  %s203_s13 = int_to_ptr.vmem [resolvable:$true] %s202_s13  ;;  %s229_s2 = int_to_ptr.hbm [resolvable:$true] %s228_s2 }
  0x32   :  { %208 = dma.hbm_to_vmem [thread:$0]  %s201_s6, 4096, %s203_s13, [#allocation23], %s4217_s8, %s4217_s8, %s4218_s24  }
  0x33   :  { %s5072_s1 = sld [smem:[#allocation72_spill]]  ;;  %s4223_s3 = smov [#allocation25]  }
  0x34   :  { %s230_s29 = sshll.u32 %s4223_s3, 4  ;;  %s4224_s25 = smov [#allocation2]   ;;  %s231_s29 = int_to_ptr.vmem [resolvable:$true] %s230_s29 }
  0x35   :  { %236 = dma.hbm_to_vmem [thread:$0]  %s229_s2, 128, %s231_s29, [#allocation26], %s4217_s8, %s4217_s8, %s4218_s24  }
  0x36   :  { %s5073_s28 = sld [smem:[#allocation74_spill]]  ;;  %s4225_s6 = smov [#allocation6]  }
  0x37   :  { %s61_s26 = sshll.u32 %s4225_s6, 4  ;;  %s5074_s30 = sld [smem:[#allocation77_spill]]  ;;  %s62_s26 = int_to_ptr.vmem [resolvable:$true] %s61_s26 }
  0x38   :  { %s4226_s2 = smov [#allocation9]   ;;  %s5075_s3 = sld [smem:[#allocation79_spill]] }
  0x39   :  { %s49_s27 = sshll.u32 %s5072_s1, 4  ;;  %s90_s9 = sshll.u32 %s4226_s2, 4  ;;  %s50_s27 = int_to_ptr.hbm [resolvable:$true] %s49_s27  ;;  %s91_s9 = int_to_ptr.vmem [resolvable:$true] %s90_s9 }
  0x3a   :  { %52 = dma.hbm_to_smem %s50_s27, 16, %s4224_s25, [#allocation5]  }
  0x3b   :  { %s5076_s5 = sld [smem:[#allocation81_spill]]  ;;  %s4227_s6 = smov [#allocation12]  }
  0x3c   :  { %s59_s4 = sshll.u32 %s5073_s28, 4  ;;  %s114_s13 = sshll.u32 %s4227_s6, 4  ;;  %s60_s4 = int_to_ptr.hbm [resolvable:$true] %s59_s4  ;;  %s115_s13 = int_to_ptr.vmem [resolvable:$true] %s114_s13 }
  0x3d   :  { %s88_s16 = sshll.u32 %s5074_s30, 4  ;;  %s160_s2 = sshll.u32 %s5007_s11, 4  ;;  %s89_s16 = int_to_ptr.hbm [resolvable:$true] %s88_s16  ;;  %s161_s2 = int_to_ptr.hbm [resolvable:$true] %s160_s2 }
  0x3e   :  { %67 = dma.hbm_to_vmem [thread:$0]  %s60_s4, 4096, %s62_s26, [#allocation3], %s4217_s8, %s4217_s8, %s4218_s24  }
  0x3f   :  { %s112_s29 = sshll.u32 %s5075_s3, 4  ;;  %s4228_s4 = smov [#allocation15]   ;;  %s113_s29 = int_to_ptr.hbm [resolvable:$true] %s112_s29 }
  0x40   :  { %93 = dma.hbm_to_vmem [thread:$0]  %s89_s16, 64, %s91_s9, [#allocation8]  }
  0x41   :  { %s136_s28 = sshll.u32 %s5076_s5, 4  ;;  %s138_s26 = sshll.u32 %s4228_s4, 4  ;;  %s137_s28 = int_to_ptr.hbm [resolvable:$true] %s136_s28  ;;  %s139_s26 = int_to_ptr.vmem [resolvable:$true] %s138_s26 }
  0x42   :  { %117 = dma.hbm_to_vmem [thread:$0]  %s113_s29, 32, %s115_s13, [#allocation11]  }
  0x43   :  { %141 = dma.hbm_to_vmem [thread:$0]  %s137_s28, 64, %s139_s26, [#allocation14]  }
  0x44   :  { %s187_s9 = sshll.u32 %s5011_s15, 4  ;;  %s4229_s27 = smov [#allocation18]   ;;  %s188_s9 = int_to_ptr.hbm [resolvable:$true] %s187_s9 }
  0x45   :  { %s162_s3 = sshll.u32 %s4229_s27, 4  ;;  %s4230_s25 = smov [#allocation21]   ;;  %s163_s3 = int_to_ptr.vmem [resolvable:$true] %s162_s3 }
  0x46   :  { %165 = dma.hbm_to_vmem [thread:$0]  %s161_s2, 32, %s163_s3, [#allocation17]  }
  0x47   :  { %s189_s29 = sshll.u32 %s4230_s25, 4  ;;  %s215_s6 = sshll.u32 %s5014_s18, 4  ;;  %s190_s29 = int_to_ptr.vmem [resolvable:$true] %s189_s29  ;;  %s216_s6 = int_to_ptr.hbm [resolvable:$true] %s215_s6 }
  0x48   :  { %195 = dma.hbm_to_vmem [thread:$0]  %s188_s9, 256, %s190_s29, [#allocation20], %s5071_s10, %s5071_s10, %s4215_s0  }
  0x49   :  { %s243_s15 = sshll.u32 %s5017_s21, 4  ;;  %s4231_s13 = smov [#allocation24]   ;;  %s244_s15 = int_to_ptr.hbm [resolvable:$true] %s243_s15 }
  0x4a   :  { %s217_s4 = sshll.u32 %s4231_s13, 4  ;;  %s4232_s26 = smov [#allocation27]   ;;  %s218_s4 = int_to_ptr.vmem [resolvable:$true] %s217_s4 }
  0x4b   :  { %223 = dma.hbm_to_vmem [thread:$0]  %s216_s6, 192, %s218_s4, [#allocation23], %s4217_s8, %s4217_s8, %s4218_s24  }
  0x4c   :  { %s245_s18 = sshll.u32 %s4232_s26, 4  ;;  %s256_s2 = sshll.u32 %s5018_s22, 4  ;;  %s246_s18 = int_to_ptr.vmem [resolvable:$true] %s245_s18  ;;  %s257_s2 = int_to_ptr.hbm [resolvable:$true] %s256_s2 }
  0x4d   :  { %251 = dma.hbm_to_vmem [thread:$0]  %s244_s15, 256, %s246_s18, [#allocation26], %s5071_s10, %s5071_s10, %s4215_s0  }
  0x4e   :  { %s4233_s21 = smov [#allocation28]  }
  0x4f   :  { %s258_s1 = sshll.u32 %s4233_s21, 4  ;;  %s259_s1 = int_to_ptr.vmem [resolvable:$true] %s258_s1 }
  0x50   :  { %264 = dma.hbm_to_vmem [thread:$0]  %s257_s2, 4096, %s259_s1, [#allocation29], %s4217_s8, %s4217_s8, %s4218_s24  }
  0x51   :  { %4189 = dma.done.wait [#allocation5], 16  }
  0x52   :  { %4190 = vsyncadd [#allocation5], 4294967280 }
  0x53   :  { %4191 = dma.done.wait [#allocation3], 4096  }
  0x54   :  { %4192 = vsyncadd [#allocation3], 4294963200 }
  0x55   :  { %4193 = dma.done.wait [#allocation8], 2112  }
  0x56   :  { %4194 = vsyncadd [#allocation8], 4294965184 }
  0x57   :  { %4195 = dma.done.wait [#allocation11], 2080  }
  0x58   :  { %4196 = vsyncadd [#allocation11], 4294965216 }
  0x59   :  { %4197 = dma.done.wait [#allocation14], 2112  }
  0x5a   :  { %4198 = vsyncadd [#allocation14], 4294965184 }
  0x5b   :  { %4199 = dma.done.wait [#allocation17], 2080  }
  0x5c   :  { %4200 = vsyncadd [#allocation17], 4294965216 }
  0x5d   :  { %4201 = dma.done.wait [#allocation20], 384  }
  0x5e   :  { %4202 = vsyncadd [#allocation20], 4294966912 }
  0x5f   :  { %4203 = dma.done.wait [#allocation23], 4288  }
  0x60   :  { %4204 = vsyncadd [#allocation23], 4294963008 }
  0x61   :  { %4205 = dma.done.wait [#allocation26], 384  }
  0x62   :  { %4206 = vsyncadd [#allocation26], 4294966912 }
  0x63   :  { %4207 = dma.done.wait [#allocation29], 4096  }
  0x64   :  { %4208 = vsyncadd [#allocation29], 4294963200 }
  0x65   :  { %335 = sfence }
  0x66   :  { %s5077_s8 = sld [smem:[#allocation73_spill]]  ;;  %v3575_v5 = vld [vmem:[#allocation22 + $0x38] sm:$0xff]  ;;  %v3574_v8 = vld [vmem:[#allocation22 + $0x30] sm:$0xff]  ;;  %vm537_vm0 = vcmask 261120   ;;  %v3573_v14 = vld [vmem:[#allocation22 + $0x28] sm:$0xff]  ;;  %vm564_vm1 = vcmask 1045504  }
  0x67   :  { %v3591_v6 = vld [vmem:[#allocation22 + $0xb8] sm:$0xff]  ;;  %668 = vmatpush.bf16.msra.mxu1 %v3575_v5  ;;  %v3590_v9 = vld [vmem:[#allocation22 + $0xb0] sm:$0xff]  ;;  %v3589_v15 = vld [vmem:[#allocation22 + $0xa8] sm:$0xff]  ;;  %vm822_vm2 = vcmask 1041408   ;;  %vm842_vm3 = vcmask 162816   ;;  %vm1656_vm4 = vcmask 1043456  }
  0x68   :  { %792 = vmatpush.bf16.msra.mxu3 %v3591_v6  ;;  %v3583_v10 = vld [vmem:[#allocation22 + $0x78] sm:$0xff]  ;;  %v3582_v13 = vld [vmem:[#allocation22 + $0x70] sm:$0xff]  ;;  %v3581_v17 = vld [vmem:[#allocation22 + $0x68] sm:$0xff]  ;;  %vm1933_vm11 = vcmask 195584   ;;  %s5130_s16 = sld [smem:[#allocation75_spill]]  ;;  %s4234_s15 = smov [#allocation31]  }
  0x69   :  { %v3599_v11 = vld [vmem:[#allocation22 + $0xf8] sm:$0xff]  ;;  %682 = vmatpush.bf16.msra.mxu2 %v3583_v10  ;;  %v3598_v16 = vld [vmem:[#allocation22 + $0xf0] sm:$0xff]  ;;  %v3572_v18 = vld [vmem:[#allocation22 + $0x20] sm:$0xff]  ;;  %s2775_s13 = sshll.u32 %s4234_s15, 4  ;;  %s2776_s13 = int_to_ptr.vmem [resolvable:$true] %s2775_s13 }
  0x6a   :  { %v3600_v12 = vld [vmem:[%s5008_s12] sm:$0xff]  ;;  %v3597_v20 = vld [vmem:[#allocation22 + $0xe8] sm:$0xff]  ;;  %v528_v21 = vld [vmem:[%s5008_s12 + $0x8] sm:$0x3]  ;;  %s2821_s12 = sld [smem:[#allocation2 + $0x1]] }
  0x6b   :  { %669 = vmatpush.bf16.msra.mxu1 %v3574_v8  ;;  %v3588_v19 = vld [vmem:[#allocation22 + $0xa0] sm:$0xff]  ;;  %v3571_v22 = vld [vmem:[#allocation22 + $0x18] sm:$0xff]  ;;  %v534_v24 = vunpack.c.l.b16 %v528_v21  ;;  %v3570_v26 = vld [vmem:[#allocation22 + $0x10] sm:$0xff] }
  0x6c   :  { %v341_v0 = vld [vmem:[%s5077_s8 + $0x10] sm:$0xff]  ;;  %v342_v1 = vld [vmem:[%s5077_s8 + $0x18] sm:$0xff]  ;;  %v339_v2 = vld [vmem:[%s5077_s8] sm:$0xff]  ;;  %793 = vmatpush.bf16.msra.mxu3 %v3590_v9 }
  0x6d   :  { %v4468_v3 = vpack.c.bf16 %v342_v1, %v341_v0  ;;  %v340_v4 = vld [vmem:[%s5077_s8 + $0x8] sm:$0xff]  ;;  %683 = vmatpush.bf16.msra.mxu2 %v3582_v13  ;;  %v3587_v23 = vld [vmem:[#allocation22 + $0x98] sm:$0xff]  ;;  %v536_v25 = vpack.c.b16 %v534_v24, %v534_v24  ;;  %v3586_v27 = vld [vmem:[#allocation22 + $0x90] sm:$0xff] }
  0x6e   :  { %v4474_v7 = vpack.c.bf16 %v340_v4, %v339_v2  ;;  %v3580_v28 = vld [vmem:[#allocation22 + $0x60] sm:$0xff]  ;;  %v3569_v30 = vld [vmem:[#allocation22 + $0x8] sm:$0xff]  ;;  %v3579_v32 = vld [vmem:[#allocation22 + $0x58] sm:$0xff] }
  0x6f   :  { %550 = vmatpush.bf16.msra.mxu0 %v4468_v3  ;;  %670 = vmatpush.bf16.msra.mxu1 %v3573_v14  ;;  %v3596_v29 = vld [vmem:[#allocation22 + $0xe0] sm:$0xff]  ;;  %v3585_v31 = vld [vmem:[#allocation22 + $0x88] sm:$0xff]  ;;  %v3595_v33 = vld [vmem:[#allocation22 + $0xd8] sm:$0xff] }
  0x70   :  { %794 = vmatpush.bf16.msra.mxu3 %v3589_v15  ;;  %v3568_v34 = vld [vmem:[#allocation22] sm:$0xff]  ;;  %v3578_v36 = vld [vmem:[#allocation22 + $0x50] sm:$0xff]  ;;  %v3577_v38 = vld [vmem:[#allocation22 + $0x48] sm:$0xff]  ;;  %s1172_s28 = sadd.f32 1.0, %s2821_s12 }
  0x71   :  { %684 = vmatpush.bf16.msra.mxu2 %v3581_v17  ;;  %v3584_v35 = vld [vmem:[#allocation22 + $0x80] sm:$0xff]  ;;  %v3594_v37 = vld [vmem:[#allocation22 + $0xd0] sm:$0xff]  ;;  %v3593_v39 = vld [vmem:[#allocation22 + $0xc8] sm:$0xff]  ;;  %s5131_s12 = sld [smem:[#allocation84_spill]] }
  0x72   :  { %v3576_v40 = vld [vmem:[#allocation22 + $0x40] sm:$0xff]  ;;  %v4485_v51 = vld [vmem:[#allocation6 + $0x78] sm:$0xff]  ;;  %v4490_v53 = vld [vmem:[#allocation6 + $0x70] sm:$0xff] }
  0x73   :  { %551 = vmatpush.bf16.msra.mxu0 %v4474_v7  ;;  %671 = vmatpush.bf16.msra.mxu1 %v3572_v18  ;;  %v3592_v41 = vld [vmem:[#allocation22 + $0xc0] sm:$0xff]  ;;  %v4487_v52 = vld [vmem:[#allocation6 + $0xb8] sm:$0xff]  ;;  %v4493_v54 = vld [vmem:[#allocation6 + $0xb0] sm:$0xff] }
  0x74   :  { %795 = vmatpush.bf16.msra.mxu3 %v3588_v19  ;;  %v4495_v55 = vld [vmem:[#allocation6 + $0x38] sm:$0xff]  ;;  %v4498_v56 = vld [vmem:[#allocation6 + $0x30] sm:$0xff]  ;;  %v4501_v58 = vld [vmem:[#allocation6 + $0x68] sm:$0xff] }
  0x75   :  { %685 = vmatpush.bf16.msra.mxu2 %v3580_v28  ;;  %v4504_v59 = vld [vmem:[#allocation6 + $0xa8] sm:$0xff]  ;;  %v4510_v62 = vld [vmem:[#allocation6 + $0x60] sm:$0xff]  ;;  %v4519_v4 = vld [vmem:[#allocation6 + $0x58] sm:$0xff] }
  0x76   :  { %2826 = vmatmul.msk.bf16.vlgmr.msra.gmra.mxu0 %vm537_vm0, %v3600_v12  ;;  %v4507_v61 = vld [vmem:[#allocation6 + $0x28] sm:$0xff]  ;;  %v4513_v63 = vld [vmem:[#allocation6 + $0xa0] sm:$0xff]  ;;  %v4522_v6 = vld [vmem:[#allocation6 + $0x98] sm:$0xff] }
  0x77   :  { %806 = vmatpush.bf16.msrb.mxu0 %v3599_v11  ;;  %672 = vmatpush.bf16.msra.mxu1 %v3571_v22  ;;  %v4516_v1 = vld [vmem:[#allocation6 + $0x20] sm:$0xff]  ;;  %v4525_v11 = vld [vmem:[#allocation6 + $0x18] sm:$0xff]  ;;  %v4528_v12 = vld [vmem:[#allocation6 + $0x50] sm:$0xff] }
  0x78   :  { %796 = vmatpush.bf16.msra.mxu3 %v3587_v23  ;;  %v4531_v15 = vld [vmem:[#allocation6 + $0x90] sm:$0xff]  ;;  %v2958_v22 = vld [vmem:[#allocation19] sm:$0xf]  ;;  %v3551_v28 = vld [vmem:[#allocation13 + $0x74] sm:$0xf0] }
  0x79   :  { %686 = vmatpush.bf16.msra.mxu2 %v3579_v32  ;;  %v3601_v23 = vld [vmem:[#allocation19] sm:$0x10]  ;;  %v4539_v24 = vld [vmem:[#allocation6 + $0x88] sm:$0xff]  ;;  %v3159_v32 = vld [vmem:[#allocation13 + $0x78] sm:$0xf0] }
  0x7b   :  { %807 = vmatpush.bf16.msrb.mxu0 %v3598_v16  ;;  %673 = vmatpush.bf16.msra.mxu1 %v3570_v26 }
  0x7c   :  { %797 = vmatpush.bf16.msra.mxu3 %v3586_v27  ;;  %v3157_v27 = vld [vmem:[#allocation13 + $0x70] sm:$0xf] }
  0x7d   :  { %687 = vmatpush.bf16.msra.mxu2 %v3578_v36  ;;  %v4550_v36 = vld [vmem:[#allocation21 + $0x8] sm:$0x3] }
  0x7f   :  { %808 = vmatpush.bf16.msrb.mxu0 %v3597_v20  ;;  %674 = vmatpush.bf16.msra.mxu1 %v3569_v30  ;;  %v4536_v20 = vld [vmem:[#allocation6 + $0x48] sm:$0xff]  ;;  %v4543_v30 = vld [vmem:[#allocation6 + $0xf8] sm:$0xff] }
  0x80   :  { %798 = vmatpush.bf16.msra.mxu3 %v3585_v31  ;;  %5078 = vst [vmem:[#allocation46_spill] sm:$0xff] %v4543_v30  ;;  %v3550_v31 = vld [vmem:[#allocation13 + $0x74] sm:$0xf] }
  0x81   :  { %688 = vmatpush.bf16.msra.mxu2 %v3577_v38  ;;  %v4555_v38 = vld [vmem:[#allocation6 + $0x80] sm:$0xff] }
  0x83   :  { %809 = vmatpush.bf16.msrb.mxu0 %v3596_v29  ;;  %675 = vmatpush.bf16.msra.mxu1 %v3568_v34  ;;  %v4546_v34 = vld [vmem:[#allocation6 + $0x40] sm:$0xff] }
  0x84   :  { %799 = vmatpush.bf16.msra.mxu3 %v3584_v35  ;;  %v4548_v35 = vld [vmem:[#allocation21] sm:$0xff] }
  0x85   :  { %689 = vmatpush.bf16.msra.mxu2 %v3576_v40  ;;  %v3149_v40 = vld [vmem:[#allocation13 + $0x60] sm:$0xf] }
  0x86   :  { %2827 = vmatmul.msk.bf16.gmra.mxu0 %vm537_vm0, %v536_v25 }
  0x87   :  { %810 = vmatpush.bf16.msrb.mxu0 %v3595_v33 }
  0x88   :  { %975 = vmatpush.bf16.msrb.mxu3 %v4485_v51 }
  0x89   :  { %961 = vmatpush.bf16.msrb.mxu2 %v4495_v55 }
  0x8b   :  { %811 = vmatpush.bf16.msrb.mxu0 %v3594_v37  ;;  %v4552_v37 = vor.u32 %v3551_v28, %v3157_v27  ;;  %v3109_v28 = vld [vmem:[#allocation13 + $0x10] sm:$0xf] }
  0x8c   :  { %976 = vmatpush.bf16.msrb.mxu3 %v4490_v53 }
  0x8d   :  { %962 = vmatpush.bf16.msrb.mxu2 %v4498_v56 }
  0x8f   :  { %812 = vmatpush.bf16.msrb.mxu0 %v3593_v39  ;;  %v2959_v39 = vor.u32 %v3601_v23, %v2958_v22  ;;  %v4605_v22 = vld [vmem:[#allocation6 + $0x8] sm:$0xff] }
  0x90   :  { %977 = vmatpush.bf16.msrb.mxu3 %v4501_v58  ;;  %v4607_v23 = vld [vmem:[#allocation6 + $0xc8] sm:$0xff] }
  0x91   :  { %963 = vmatpush.bf16.msrb.mxu2 %v4507_v61  ;;  %5084 = vst [vmem:[#allocation52_spill] sm:$0xff] %v4607_v23 }
  0x93   :  { %813 = vmatpush.bf16.msrb.mxu0 %v3592_v41  ;;  %v3549_v41 = vld [vmem:[#allocation13 + $0x64] sm:$0xf0] }
  0x94   :  { %978 = vmatpush.bf16.msrb.mxu3 %v4510_v62 }
  0x95   :  { %964 = vmatpush.bf16.msrb.mxu2 %v4516_v1 }
  0x97   :  { %1085 = vmatpush.bf16.msra.mxu0 %v4487_v52 }
  0x98   :  { %979 = vmatpush.bf16.msrb.mxu3 %v4519_v4 }
  0x99   :  { %965 = vmatpush.bf16.msrb.mxu2 %v4525_v11 }
  0x9b   :  { %1086 = vmatpush.bf16.msra.mxu0 %v4493_v54 }
  0x9c   :  { %980 = vmatpush.bf16.msrb.mxu3 %v4528_v12 }
  0x9f   :  { %1087 = vmatpush.bf16.msra.mxu0 %v4504_v59 }
  0xa0   :  { %981 = vmatpush.bf16.msrb.mxu3 %v4536_v20 }
  0xa3   :  { %1088 = vmatpush.bf16.msra.mxu0 %v4513_v63 }
  0xa4   :  { %982 = vmatpush.bf16.msrb.mxu3 %v4546_v34 }
  0xa7   :  { %1089 = vmatpush.bf16.msra.mxu0 %v4522_v6 }
  0xab   :  { %1090 = vmatpush.bf16.msra.mxu0 %v4531_v15 }
  0xaf   :  { %1091 = vmatpush.bf16.msra.mxu0 %v4539_v24 }
  0xb3   :  { %1092 = vmatpush.bf16.msra.mxu0 %v4555_v38 }
  0xf3   :  { %v553_v42 = vpop.f32.mrf.mxu0 }
  0xfb   :  { %v555_v43 = vpop.f32.mrf.mxu0 }
  0xfc   :  { %v570_v44 = vpack.c.bf16 %v555_v43, %v553_v42  ;;  %v565_v46 = vrot.slane %v555_v43, 2  ;;  %v4557_v42 = vor.u32 %v3550_v31, %v3159_v32  ;;  %v4561_v43 = vpack.c.bf16 %v4550_v36, %v4548_v35  ;;  %v3544_v32 = vld [vmem:[#allocation13 + $0x44] sm:$0xf] }
  0xfe   :  { %676 = vmatmul.bf16.vlgmr.msra.gmra.mxu1 %v570_v44  ;;  %800 = vmatmul.bf16.vlgmr.msra.gmra.mxu3 %v570_v44  ;;  %v4565_v44 = vld [vmem:[#allocation6 + $0xf0] sm:$0xff] }
  0xff   :  { %5079 = vst [vmem:[#allocation47_spill] sm:$0xff] %v4565_v44  ;;  %1259 = vmatpush.bf16.msra.mxu3 %v4552_v37 }
 0x103   :  { %v558_v45 = vpop.f32.mrf.mxu0 }
 0x104   :  { %v566_v47 = vrot.slane %v558_v45, 2  ;;  %v4568_v45 = vor.u32 %v3549_v41, %v3149_v40  ;;  %v4620_v40 = vld [vmem:[#allocation6 + $0xc0] sm:$0xff] }
 0x105   :  { %5086 = vst [vmem:[#allocation54_spill] sm:$0xff] %v4620_v40 }
 0x106   :  { %v567_v48 = vsel %vm564_vm1, %v565_v46, %v566_v47  ;;  %v3141_v46 = vld [vmem:[#allocation13 + $0x50] sm:$0xf]  ;;  %1260 = vmatpush.bf16.msra.mxu3 %v4568_v45 }
 0x107   :  { %v571_v49 = vpack.c.bf16 %v566_v47, %v567_v48  ;;  %v3547_v47 = vld [vmem:[#allocation13 + $0x54] sm:$0xf0]  ;;  %v4575_v48 = vld [vmem:[#allocation6 + $0xe8] sm:$0xff] }
 0x108   :  { %5080 = vst [vmem:[#allocation48_spill] sm:$0xff] %v4575_v48 }
 0x109   :  { %690 = vmatmul.bf16.vlgmr.msra.gmra.mxu2 %v571_v49  ;;  %814 = vmatmul.bf16.vlgmr.msrb.gmra.mxu0 %v571_v49  ;;  %v4578_v49 = vor.u32 %v3547_v47, %v3141_v46  ;;  %v3101_v46 = vld [vmem:[#allocation13] sm:$0xf]  ;;  %v3537_v47 = vld [vmem:[#allocation13 + $0x4] sm:$0xf0] }
 0x10a   :  { %1273 = vmatpush.bf16.msrb.mxu0 %v4557_v42 }
 0x10b   :  { %v560_v50 = vpop.f32.mrf.mxu0  ;;  %1261 = vmatpush.bf16.msra.mxu3 %v4578_v49 }
 0x10c   :  { %v3133_v50 = vld [vmem:[#allocation13 + $0x40] sm:$0xf] }
 0x10e   :  { %983 = vmatmul.bf16.vlgmr.msrb.gmra.mxu3 %v4561_v43 }
 0x17b   :  { %v677_v0 = vpop.f32.mrf.mxu1 }
 0x181   :  { %v801_v57 = vpop.f32.mrf.mxu3 }
 0x183   :  { %v679_v17 = vpop.f32.mrf.mxu1 }
 0x186   :  { %v815_v60 = vpop.f32.mrf.mxu0 }
 0x187   :  { %v816_v5 = vadd.f32 %v815_v60, %v801_v57  ;;  %v3545_v57 = vld [vmem:[#allocation13 + $0x44] sm:$0xf0]  ;;  %v4581_v60 = vld [vmem:[#allocation6 + $0xe0] sm:$0xff] }
 0x188   :  { %5081 = vst [vmem:[#allocation49_spill] sm:$0xff] %v4581_v60 }
 0x189   :  { %v803_v8 = vpop.f32.mrf.mxu3  ;;  %v823_v13 = vrot.slane %v816_v5, 6  ;;  %v3125_v5 = vld [vmem:[#allocation13 + $0x30] sm:$0xf] }
 0x18c   :  { %v691_v2 = vpop.f32.mrf.mxu2 }
 0x18d   :  { %v692_v25 = vadd.f32 %v691_v2, %v677_v0  ;;  %v4584_v0 = vor.u32 %v3545_v57, %v3133_v50  ;;  %v4587_v2 = vld [vmem:[#allocation6 + $0xd8] sm:$0xff]  ;;  %v4626_v50 = vor.u32 %v3537_v47, %v3101_v46 }
 0x18e   :  { %v817_v9 = vpop.f32.mrf.mxu0  ;;  %5082 = vst [vmem:[#allocation50_spill] sm:$0xff] %v4587_v2  ;;  %v3542_v57 = vld [vmem:[#allocation13 + $0x34] sm:$0xf] }
 0x18f   :  { %v818_v10 = vadd.f32 %v817_v9, %v803_v8  ;;  %1262 = vmatpush.bf16.msra.mxu3 %v4584_v0  ;;  %v3543_v8 = vld [vmem:[#allocation13 + $0x34] sm:$0xf0]  ;;  %5087 = vst [vmem:[#allocation55_spill] sm:$0xff] %v4626_v50 }
 0x190   :  { %v4591_v9 = vor.u32 %v3543_v8, %v3125_v5  ;;  %v3127_v5 = vld [vmem:[#allocation13 + $0x38] sm:$0xf0] }
 0x191   :  { %v824_v14 = vrot.slane %v818_v10, 6  ;;  %v3548_v10 = vld [vmem:[#allocation13 + $0x64] sm:$0xf]  ;;  %v4630_v8 = vor.u32 %v3542_v57, %v3127_v5 }
 0x193   :  { %v825_v16 = vsel %vm822_vm2, %v823_v13, %v824_v14  ;;  %1263 = vmatpush.bf16.msra.mxu3 %v4591_v9  ;;  %v4594_v14 = vld [vmem:[#allocation6 + $0x10] sm:$0xff] }
 0x194   :  { %v693_v18 = vpop.f32.mrf.mxu2  ;;  %v830_v19 = vpack.c.bf16 %v825_v16, %v825_v16  ;;  %v4596_v16 = vld [vmem:[#allocation6 + $0xd0] sm:$0xff]  ;;  %966 = vmatpush.bf16.msrb.mxu2 %v4594_v14 }
 0x195   :  { %v694_v21 = vadd.f32 %v693_v18, %v679_v17  ;;  %5083 = vst [vmem:[#allocation51_spill] sm:$0xff] %v4596_v16  ;;  %v3117_v18 = vld [vmem:[#allocation13 + $0x20] sm:$0xf] }
 0x196   :  { %v847_v26 = vsel %vm822_vm2, %v830_v19, 0  ;;  %v3541_v19 = vld [vmem:[#allocation13 + $0x24] sm:$0xf0] }
 0x197   :  { %855 = vmatpush.bf16.msrb.mxu1 %v847_v26  ;;  %v828_v29 = vsel %vm822_vm2, %v694_v21, %v823_v13  ;;  %v3151_v13 = vld [vmem:[#allocation13 + $0x68] sm:$0xf0]  ;;  %v4602_v21 = vor.u32 %v3541_v19, %v3117_v18  ;;  %v3143_v26 = vld [vmem:[#allocation13 + $0x58] sm:$0xf0]  ;;  %v3538_v19 = vld [vmem:[#allocation13 + $0x14] sm:$0xf] }
 0x198   :  { %v829_v33 = vpack.c.bf16 %v828_v29, %v692_v25  ;;  %v4598_v17 = vor.u32 %v3548_v10, %v3151_v13  ;;  %v3546_v25 = vld [vmem:[#allocation13 + $0x54] sm:$0xf]  ;;  %v3539_v29 = vld [vmem:[#allocation13 + $0x14] sm:$0xf0]  ;;  %967 = vmatpush.bf16.msrb.mxu2 %v4605_v22  ;;  %v3540_v10 = vld [vmem:[#allocation13 + $0x24] sm:$0xf] }
 0x199   :  { %1264 = vmatpush.bf16.msra.mxu3 %v4602_v21  ;;  %v4610_v27 = vor.u32 %v3546_v25, %v3143_v26  ;;  %v4614_v31 = vor.u32 %v3539_v29, %v3109_v28  ;;  %v3119_v13 = vld [vmem:[#allocation13 + $0x28] sm:$0xf0]  ;;  %v3111_v25 = vld [vmem:[#allocation13 + $0x18] sm:$0xf0]  ;;  %v3536_v28 = vld [vmem:[#allocation13 + $0x4] sm:$0xf] }
 0x19a   :  { %1274 = vmatpush.bf16.msrb.mxu0 %v4598_v17  ;;  %v4635_v18 = vor.u32 %v3540_v10, %v3119_v13  ;;  %v4639_v26 = vor.u32 %v3538_v19, %v3111_v25  ;;  %v3103_v29 = vld [vmem:[#allocation13 + $0x8] sm:$0xf0] }
 0x19b   :  { %856 = vmatpush.bf16.msrb.mxu1 %v829_v33  ;;  %5085 = vst [vmem:[#allocation53_spill] sm:$0xff] %v4614_v31  ;;  %v3135_v33 = vld [vmem:[#allocation13 + $0x48] sm:$0xf0] }
 0x19c   :  { %v4622_v41 = vor.u32 %v3544_v32, %v3135_v33  ;;  %v3696_v32 = vld [vmem:[%s5013_s17] ss:$0 sm:$0xff]  ;;  %s4235_s17 = smov [#allocation33]  }
 0x19d   :  { %1265 = vmatpush.bf16.msra.mxu3 %v4614_v31  ;;  %s2788_s4 = sshll.u32 %s4235_s17, 4  ;;  %s2789_s4 = int_to_ptr.vmem [resolvable:$true] %s2788_s4 }
 0x19e   :  { %2960 = vmatmul.msk.bf16.vlgmr.msrb.gmra.mxu1 %vm842_vm3, %v2959_v39  ;;  %1275 = vmatpush.bf16.msrb.mxu0 %v4610_v27  ;;  %v4618_v39 = vld [vmem:[#allocation6] sm:$0xff] }
 0x19f   :  { %1099 = vmatpush.bf16.msra.mxu1 %v4543_v30  ;;  %968 = vmatpush.bf16.msrb.mxu2 %v4618_v39 }
 0x1a1   :  { %1266 = vmatpush.bf16.msra.mxu3 %v4626_v50 }
 0x1a2   :  { %1276 = vmatpush.bf16.msrb.mxu0 %v4622_v41 }
 0x1a3   :  { %1100 = vmatpush.bf16.msra.mxu1 %v4565_v44  ;;  %v3630_v44 = vld [vmem:[#allocation28 + $0xd0] sm:$0xff] }
 0x1a5   :  { %1642 = vmatpush.bf16.msrb.mxu3 %v4468_v3 }
 0x1a6   :  { %1277 = vmatpush.bf16.msrb.mxu0 %v4630_v8 }
 0x1a7   :  { %1101 = vmatpush.bf16.msra.mxu1 %v4575_v48  ;;  %v3618_v48 = vld [vmem:[#allocation28 + $0x70] sm:$0xff] }
 0x1a9   :  { %1643 = vmatpush.bf16.msrb.mxu3 %v4474_v7  ;;  %v4648_v7 = vstv %s1172_s28  ;;  %s2777_s28 = sshll.u32 %s5131_s12, 4  ;;  %s2778_s28 = int_to_ptr.hbm [resolvable:$true] %s2777_s28 }
 0x1aa   :  { %1278 = vmatpush.bf16.msrb.mxu0 %v4635_v18  ;;  %5088 = vst [vmem:[#allocation56_spill] sm:$0xff] %v4648_v7  ;;  %v1174_v46 = vmul.f32 %v4648_v7, %v4548_v35  ;;  %v1175_v47 = vmul.f32 %v4648_v7, %v4550_v36  ;;  %v984_v35 = vpop.f32.mrf.mxu3 }
 0x1ab   :  { %1102 = vmatpush.bf16.msra.mxu1 %v4581_v60  ;;  %v3607_v60 = vld [vmem:[#allocation28 + $0x18] sm:$0xff] }
 0x1ae   :  { %1279 = vmatpush.bf16.msrb.mxu0 %v4639_v26 }
 0x1af   :  { %1103 = vmatpush.bf16.msra.mxu1 %v4587_v2 }
 0x1b2   :  { %v986_v7 = vpop.f32.mrf.mxu3 }
 0x1b3   :  { %1104 = vmatpush.bf16.msra.mxu1 %v4596_v16 }
 0x1b7   :  { %1105 = vmatpush.bf16.msra.mxu1 %v4607_v23 }
 0x1bb   :  { %1106 = vmatpush.bf16.msra.mxu1 %v4620_v40 }
 0x1be   :  { %1107 = vmatmul.bf16.vlgmr.msra.gmra.mxu1 %v4561_v43  ;;  %v4642_v43 = vor.u32 %v3536_v28, %v3103_v29  ;;  %v3636_v28 = vld [vmem:[#allocation24] sm:$0xff]  ;;  %v1621_v29 = vld [vmem:[#allocation24 + $0x8] sm:$0xf] }
 0x1c0   :  { %1280 = vmatpush.bf16.msrb.mxu0 %v4642_v43 }
 0x21b   :  { %v858_v3 = vpop.f32.mrf.mxu1 }
 0x21c   :  { %v859_v33 = vadd.f32 %v3696_v32, %v858_v3  ;;  %v1627_v3 = vunpack.c.l.b16 %v1621_v29 }
 0x21e   :  { %v1176_v10 = vadd.f32 %v1174_v46, %v859_v33  ;;  %v1629_v40 = vpack.c.b16 %v1627_v3, %v1627_v3 }
 0x223   :  { %v860_v57 = vpop.f32.mrf.mxu1 }
 0x224   :  { %v861_v5 = vadd.f32 %v3696_v32, %v860_v57  ;;  %v4656_v57 = vld [vmem:[#allocation16 + $0x38] sm:$0xff] }
 0x225   :  { %5089 = vst [vmem:[#allocation57_spill] sm:$0xff] %v4656_v57  ;;  %1480 = vmatpush.bf16.msrb.mxu1 %v4656_v57 }
 0x226   :  { %v863_v13 = vpack.c.bf16 %v861_v5, %v859_v33  ;;  %v1177_v19 = vadd.f32 %v1175_v47, %v861_v5 }
 0x228   :  { %v1178_v25 = vpack.c.bf16 %v1177_v19, %v1176_v10  ;;  %969 = vmatmul.bf16.vlgmr.msrb.gmra.mxu2 %v863_v13  ;;  %1093 = vmatmul.bf16.vlgmr.msra.gmra.mxu0 %v863_v13 }
 0x22a   :  { %1267 = vmatmul.bf16.vlgmr.msra.gmra.mxu3 %v1178_v25 }
 0x238   :  { %1281 = vmatmul.bf16.vlgmr.msrb.gmra.mxu0 %v1178_v25 }
 0x23a   :  { %3231 = vmatmul.msk.bf16.vlgmr.msrb.gmra.mxu3 %vm537_vm0, %v3636_v28  ;;  %v4661_v28 = vld [vmem:[#allocation16 + $0x30] sm:$0xff] }
 0x23b   :  { %v1108_v36 = vpop.f32.mrf.mxu1  ;;  %5090 = vst [vmem:[#allocation58_spill] sm:$0xff] %v4661_v28  ;;  %1481 = vmatpush.bf16.msrb.mxu1 %v4661_v28  ;;  %v3608_v28 = vld [vmem:[#allocation28 + $0x20] sm:$0xff] }
 0x243   :  { %v1110_v33 = vpop.f32.mrf.mxu1 }
 0x24a   :  { %3232 = vmatmul.msk.bf16.gmra.mxu3 %vm537_vm0, %v1629_v40 }
 0x2a5   :  { %v1094_v32 = vpop.f32.mrf.mxu0 }
 0x2a6   :  { %v1109_v47 = vadd.f32 %v1108_v36, %v1094_v32  ;;  %v4665_v36 = vld [vmem:[#allocation16 + $0x28] sm:$0xff] }
 0x2a7   :  { %5091 = vst [vmem:[#allocation59_spill] sm:$0xff] %v4665_v36  ;;  %1482 = vmatpush.bf16.msrb.mxu1 %v4665_v36  ;;  %v3633_v36 = vld [vmem:[#allocation28 + $0xe8] sm:$0xff] }
 0x2a8   :  { %v1115_v19 = vrot.slane %v1109_v47, 6 }
 0x2ab   :  { %v970_v46 = vpop.f32.mrf.mxu2 }
 0x2ac   :  { %v985_v32 = vadd.f32 %v984_v35, %v970_v46  ;;  %v4676_v35 = vld [vmem:[#allocation16 + $0x20] sm:$0xff] }
 0x2ad   :  { %v1096_v5 = vpop.f32.mrf.mxu0  ;;  %v4658_v10 = vpop.f32.mrf.mxu3  ;;  %5093 = vst [vmem:[#allocation61_spill] sm:$0xff] %v4676_v35  ;;  %1483 = vmatpush.bf16.msrb.mxu1 %v4676_v35 }
 0x2ae   :  { %v1111_v13 = vadd.f32 %v1110_v33, %v1096_v5 }
 0x2b0   :  { %v1116_v25 = vrot.slane %v1111_v13, 6  ;;  %v3611_v13 = vld [vmem:[#allocation28 + $0x38] sm:$0xff] }
 0x2b1   :  { %1760 = vmatpush.bf16.msra.mxu0 %v3611_v13  ;;  %v3634_v13 = vld [vmem:[#allocation28 + $0xf0] sm:$0xff] }
 0x2b2   :  { %v1117_v40 = vsel %vm822_vm2, %v1115_v19, %v1116_v25 }
 0x2b3   :  { %v972_v29 = vpop.f32.mrf.mxu2  ;;  %v1122_v3 = vpack.c.bf16 %v1117_v40, %v1117_v40 }
 0x2b4   :  { %v987_v23 = vadd.f32 %v986_v7, %v972_v29  ;;  %v4674_v7 = vld [vmem:[#allocation16 + $0x78] sm:$0xff] }
 0x2b5   :  { %v1270_v16 = vpop.f32.mrf.mxu3  ;;  %v4667_v2 = vpop.f32.mrf.mxu0  ;;  %v1144_v33 = vsel %vm822_vm2, %v1122_v3, 0  ;;  %5092 = vst [vmem:[#allocation60_spill] sm:$0xff] %v4674_v7  ;;  %v3602_v29 = vld [vmem:[%s5010_s14] sm:$0xff] }
 0x2b6   :  { %v1287_v47 = vsel %vm822_vm2, %v1270_v16, 0.0  ;;  %1152 = vmatpush.bf16.msra.mxu2 %v1144_v33  ;;  %v1120_v5 = vsel %vm822_vm2, %v987_v23, %v1115_v19  ;;  %v3635_v3 = vld [vmem:[#allocation28 + $0xf8] sm:$0xff]  ;;  %v3610_v23 = vld [vmem:[#allocation28 + $0x30] sm:$0xff] }
 0x2b7   :  { %v1288_v25 = vadd.f32 %v1287_v47, %v4658_v10  ;;  %v1121_v40 = vpack.c.bf16 %v1120_v5, %v985_v32  ;;  %v4683_v33 = vld [vmem:[#allocation16 + $0x70] sm:$0xff]  ;;  %1898 = vmatpush.bf16.msra.mxu3 %v3635_v3  ;;  %1761 = vmatpush.bf16.msra.mxu0 %v3610_v23  ;;  %v4685_v32 = vld [vmem:[#allocation16 + $0x18] sm:$0xff]  ;;  %v4695_v3 = vld [vmem:[#allocation16 + $0x68] sm:$0xff] }
 0x2b8   :  { %5094 = vst [vmem:[#allocation62_spill] sm:$0xff] %v4683_v33  ;;  %1484 = vmatpush.bf16.msrb.mxu1 %v4685_v32  ;;  %v4697_v23 = vld [vmem:[#allocation16 + $0x10] sm:$0xff] }
 0x2b9   :  { %v1289_v46 = vrot.slane %v1288_v25, 4  ;;  %5095 = vst [vmem:[#allocation63_spill] sm:$0xff] %v4685_v32 }
 0x2ba   :  { %1153 = vmatpush.bf16.msra.mxu2 %v1121_v40  ;;  %5096 = vst [vmem:[#allocation64_spill] sm:$0xff] %v4695_v3 }
 0x2bb   :  { %v1290_v19 = vadd.f32 %v1289_v46, %v1288_v25  ;;  %v3609_v25 = vld [vmem:[#allocation28 + $0x28] sm:$0xff]  ;;  %1899 = vmatpush.bf16.msra.mxu3 %v3634_v13  ;;  %5097 = vst [vmem:[#allocation65_spill] sm:$0xff] %v4697_v23 }
 0x2bc   :  { %1762 = vmatpush.bf16.msra.mxu0 %v3609_v25  ;;  %1485 = vmatpush.bf16.msrb.mxu1 %v4697_v23  ;;  %v4705_v13 = vld [vmem:[#allocation16 + $0x8] sm:$0xff] }
 0x2bd   :  { %v1291_v47 = vrot.slane %v1290_v19, 2  ;;  %v4687_v5 = vpop.f32.mrf.mxu0  ;;  %3097 = vmatmul.msk.bf16.vlgmr.msra.gmra.mxu2 %vm842_vm3, %v3602_v29  ;;  %5099 = vst [vmem:[#allocation67_spill] sm:$0xff] %v4705_v13 }
 0x2be   :  { %1494 = vmatpush.bf16.msrb.mxu2 %v4674_v7  ;;  %v1295_v40 = vsel %vm822_vm2, %v4687_v5, 0.0 }
 0x2bf   :  { %v1292_v46 = vadd.f32 %v1291_v47, %v1290_v19  ;;  %v1296_v7 = vadd.f32 %v1295_v40, %v4667_v2  ;;  %v4701_v19 = vld [vmem:[#allocation16 + $0x60] sm:$0xff]  ;;  %1900 = vmatpush.bf16.msra.mxu3 %v3633_v36  ;;  %v4703_v47 = vpop.f32.mrf.mxu3  ;;  %v4714_v36 = vld [vmem:[#allocation16 + $0x58] sm:$0xff] }
 0x2c0   :  { %5098 = vst [vmem:[#allocation66_spill] sm:$0xff] %v4701_v19  ;;  %1763 = vmatpush.bf16.msra.mxu0 %v3608_v28  ;;  %1486 = vmatpush.bf16.msrb.mxu1 %v4705_v13  ;;  %v4716_v28 = vld [vmem:[#allocation16] sm:$0xff] }
 0x2c1   :  { %v1293_v35 = vrot.slane %v1292_v46, 1  ;;  %v1297_v29 = vrot.slane %v1296_v7, 4  ;;  %5100 = vst [vmem:[#allocation68_spill] sm:$0xff] %v4714_v36 }
 0x2c2   :  { %1495 = vmatpush.bf16.msrb.mxu2 %v4683_v33  ;;  %v3632_v33 = vld [vmem:[#allocation28 + $0xe0] sm:$0xff]  ;;  %5101 = vst [vmem:[#allocation69_spill] sm:$0xff] %v4716_v28 }
 0x2c3   :  { %v1294_v57 = vadd.f32 %v1293_v35, %v1292_v46  ;;  %v1298_v32 = vadd.f32 %v1297_v29, %v1296_v7  ;;  %1901 = vmatpush.bf16.msra.mxu3 %v3632_v33 }
 0x2c4   :  { %1764 = vmatpush.bf16.msra.mxu0 %v3607_v60  ;;  %1487 = vmatpush.bf16.msrb.mxu1 %v4716_v28  ;;  %v3605_v28 = vld [vmem:[#allocation28 + $0x8] sm:$0xff] }
 0x2c5   :  { %v1303_v40 = vmul.f32 0.1, %v1294_v57  ;;  %v1299_v25 = vrot.slane %v1298_v32, 2 }
 0x2c6   :  { %1496 = vmatpush.bf16.msrb.mxu2 %v4695_v3 }
 0x2c7   :  { %v4709_v23 = vsub.f32 %v4658_v10, %v1303_v40  ;;  %v4711_v7 = vsub.f32 %v1270_v16, %v1303_v40  ;;  %v1300_v35 = vadd.f32 %v1299_v25, %v1298_v32  ;;  %v3603_v16 = vld [vmem:[%s5010_s14 + $0x8] sm:$0xff]  ;;  %v3619_v10 = vld [vmem:[#allocation28 + $0x78] sm:$0xff]  ;;  %v3606_v40 = vld [vmem:[#allocation28 + $0x10] sm:$0xff]  ;;  %v1647_v3 = vpop.f32.mrf.mxu3  ;;  %s5132_s14 = sld [smem:[#allocation85_spill]] }
 0x2c8   :  { %v3631_v32 = vld [vmem:[#allocation28 + $0xd8] sm:$0xff]  ;;  %1774 = vmatpush.bf16.msra.mxu1 %v3619_v10  ;;  %1765 = vmatpush.bf16.msra.mxu0 %v3606_v40  ;;  %v3617_v10 = vld [vmem:[#allocation28 + $0x68] sm:$0xff]  ;;  %v3604_v40 = vld [vmem:[#allocation28] sm:$0xff] }
 0x2c9   :  { %v1309_v57 = vmul.f32 %v4709_v23, %v4709_v23  ;;  %v1311_v46 = vmul.f32 %v4711_v7, %v4711_v7  ;;  %v1301_v29 = vrot.slane %v1300_v35, 1  ;;  %v4728_v25 = vld [vmem:[#allocation16 + $0x50] sm:$0xff]  ;;  %1902 = vmatpush.bf16.msra.mxu3 %v3631_v32 }
 0x2ca   :  { %1497 = vmatpush.bf16.msrb.mxu2 %v4701_v19  ;;  %5102 = vst [vmem:[#allocation70_spill] sm:$0xff] %v4728_v25 }
 0x2cb   :  { %v1313_v60 = vsel %vm822_vm2, %v1311_v46, 0.0  ;;  %v1302_v33 = vadd.f32 %v1301_v29, %v1300_v35  ;;  %v4738_v46 = vld [vmem:[#allocation16 + $0x48] sm:$0xff] }
 0x2cc   :  { %v1314_v19 = vadd.f32 %v1313_v60, %v1309_v57  ;;  %1775 = vmatpush.bf16.msra.mxu1 %v3618_v48  ;;  %1766 = vmatpush.bf16.msra.mxu0 %v3605_v28  ;;  %v3627_v48 = vld [vmem:[#allocation28 + $0xb8] sm:$0xff]  ;;  %v1657_v28 = vrot.slane %v1647_v3, 4  ;;  %v4749_v60 = vpack.c.bf16 %v1647_v3, %v4703_v47 }
 0x2cd   :  { %v1304_v13 = vmul.f32 0.1, %v1302_v33  ;;  %3098 = vmatmul.msk.bf16.gmra.mxu2 %vm842_vm3, %v3603_v16  ;;  %1903 = vmatpush.bf16.msra.mxu3 %v3630_v44  ;;  %v3615_v3 = vld [vmem:[#allocation28 + $0x58] sm:$0xff]  ;;  %s2790_s7 = sshll.u32 %s5132_s14, 4  ;;  %s2791_s7 = int_to_ptr.hbm [resolvable:$true] %s2790_s7 }
 0x2ce   :  { %1498 = vmatpush.bf16.msrb.mxu2 %v4714_v36  ;;  %v1315_v30 = vrot.slane %v1314_v19, 4  ;;  %v3628_v36 = vld [vmem:[#allocation28 + $0xc0] sm:$0xff] }
 0x2cf   :  { %v4732_v50 = vsub.f32 %v4667_v2, %v1304_v13  ;;  %v4735_v35 = vsub.f32 %v4687_v5, %v1304_v13  ;;  %v3629_v2 = vld [vmem:[#allocation28 + $0xc8] sm:$0xff] }
 0x2d0   :  { %v1316_v57 = vadd.f32 %v1315_v30, %v1314_v19  ;;  %v4746_v13 = vld [vmem:[#allocation16 + $0x40] sm:$0xff]  ;;  %1776 = vmatpush.bf16.msra.mxu1 %v3617_v10  ;;  %v1650_v19 = vpop.f32.mrf.mxu3  ;;  %1767 = vmatpush.bf16.msra.mxu0 %v3604_v40 }
 0x2d1   :  { %v1310_v29 = vmul.f32 %v4732_v50, %v4732_v50  ;;  %v1312_v16 = vmul.f32 %v4735_v35, %v4735_v35  ;;  %5103 = vst [vmem:[#allocation71_spill] sm:$0xff] %v4746_v13  ;;  %1904 = vmatpush.bf16.msra.mxu3 %v3629_v2  ;;  %v1658_v33 = vrot.slane %v1650_v19, 4  ;;  %v3626_v2 = vld [vmem:[#allocation28 + $0xb0] sm:$0xff] }
 0x2d2   :  { %1499 = vmatpush.bf16.msrb.mxu2 %v4728_v25  ;;  %v1317_v32 = vrot.slane %v1316_v57, 2  ;;  %v3616_v25 = vld [vmem:[#allocation28 + $0x60] sm:$0xff] }
 0x2d3   :  { %v1321_v5 = vsel %vm822_vm2, %v1312_v16, 0.0  ;;  %v1659_v10 = vsel %vm1656_vm4, %v1657_v28, %v1658_v33  ;;  %1768 = vmatmul.bf16.vlgmr.msra.gmra.mxu0 %v4749_v60  ;;  %v3625_v28 = vld [vmem:[#allocation28 + $0xa8] sm:$0xff] }
 0x2d4   :  { %v1318_v30 = vadd.f32 %v1317_v32, %v1316_v57  ;;  %v1322_v44 = vadd.f32 %v1321_v5, %v1310_v29  ;;  %1777 = vmatpush.bf16.msra.mxu1 %v3616_v25  ;;  %v4754_v32 = vpack.c.bf16 %v1658_v33, %v1659_v10 }
 0x2d5   :  { %1905 = vmatpush.bf16.msra.mxu3 %v3628_v36  ;;  %v3624_v36 = vld [vmem:[#allocation28 + $0xa0] sm:$0xff] }
 0x2d6   :  { %1500 = vmatpush.bf16.msrb.mxu2 %v4738_v46  ;;  %v1319_v31 = vrot.slane %v1318_v30, 1  ;;  %v1323_v16 = vrot.slane %v1322_v44, 4 }
 0x2d8   :  { %v1320_v57 = vadd.f32 %v1319_v31, %v1318_v30  ;;  %v1324_v29 = vadd.f32 %v1323_v16, %v1322_v44  ;;  %1906 = vmatmul.bf16.vlgmr.msra.gmra.mxu3 %v4754_v32  ;;  %1778 = vmatpush.bf16.msra.mxu1 %v3615_v3  ;;  %v3614_v31 = vld [vmem:[#allocation28 + $0x50] sm:$0xff]  ;;  %v3613_v44 = vld [vmem:[#allocation28 + $0x48] sm:$0xff]  ;;  %v3623_v16 = vld [vmem:[#allocation28 + $0x98] sm:$0xff] }
 0x2d9   :  { %1984 = vmatpush.bf16.msrb.mxu3 %v4487_v52 }
 0x2da   :  { %1501 = vmatpush.bf16.msrb.mxu2 %v4746_v13  ;;  %v1329_v47 = vmul.f32 0.1, %v1320_v57  ;;  %v1325_v40 = vrot.slane %v1324_v29, 2  ;;  %v1652_v13 = vpop.f32.mrf.mxu3  ;;  %v425_v57 = vld [vmem:[#allocation15] sm:$0xf] }
 0x2db   :  { %v3612_v13 = vld [vmem:[#allocation28 + $0x40] sm:$0xff]  ;;  %v1358_v3 = vperm.slane %v425_v57, 0 }
 0x2dc   :  { %v1331_v5 = vadd.f32 1e-05, %v1329_v47  ;;  %v1326_v19 = vadd.f32 %v1325_v40, %v1324_v29  ;;  %1779 = vmatpush.bf16.msra.mxu1 %v3614_v31  ;;  %v3622_v29 = vld [vmem:[#allocation28 + $0x90] sm:$0xff]  ;;  %v1368_v40 = vperm.slane %v425_v57, 1 }
 0x2dd   :  { %1985 = vmatpush.bf16.msrb.mxu3 %v4493_v54 }
 0x2de   :  { %1884 = vmatpush.bf16.msra.mxu2 %v3627_v48  ;;  %3699 = vrsqrt.f32 %v1331_v5  ;;  %v1327_v25 = vrot.slane %v1326_v19, 1  ;;  %vm1339_vm6 = vweird.f32 %v1331_v5 }
 0x2e0   :  { %v1328_v30 = vadd.f32 %v1327_v25, %v1326_v19  ;;  %1780 = vmatpush.bf16.msra.mxu1 %v3613_v44  ;;  %v3621_v19 = vld [vmem:[#allocation28 + $0x88] sm:$0xff]  ;;  %v4767_v44 = vperm.slane %v1368_v40, 1 }
 0x2e1   :  { %1986 = vmatpush.bf16.msrb.mxu3 %v4504_v59 }
 0x2e2   :  { %1885 = vmatpush.bf16.msra.mxu2 %v3626_v2  ;;  %v1330_v48 = vmul.f32 0.1, %v1328_v30 }
 0x2e4   :  { %v3700_v52 = vpop.eup %3699  ;;  %v1332_v33 = vadd.f32 1e-05, %v1330_v48  ;;  %1781 = vmatpush.bf16.msra.mxu1 %v3612_v13  ;;  %v3620_v48 = vld [vmem:[#allocation28 + $0x80] sm:$0xff]  ;;  %v1359_v13 = vperm.slane %v425_v57, 2 }
 0x2e5   :  { %v1334_v10 = vmul.f32 %v3700_v52, %v1331_v5  ;;  %1987 = vmatpush.bf16.msrb.mxu3 %v4513_v63  ;;  %vm1340_vm5 = vweird.f32 %v3700_v52  ;;  %v4762_v63 = vperm.slane %v1358_v3, 0 }
 0x2e6   :  { %1886 = vmatpush.bf16.msra.mxu2 %v3625_v28  ;;  %3701 = vrsqrt.f32 %v1332_v33  ;;  %vm1341_vm7 = vmor %vm1339_vm6, %vm1340_vm5  ;;  %vm1349_vm9 = vweird.f32 %v1332_v33 }
 0x2e7   :  { %v1335_v54 = vmul.f32 %v3700_v52, %v1334_v10 }
 0x2e9   :  { %v1336_v2 = vmul.f32 0.5, %v1335_v54  ;;  %1988 = vmatpush.bf16.msrb.mxu3 %v4522_v6 }
 0x2ea   :  { %1887 = vmatpush.bf16.msra.mxu2 %v3624_v36 }
 0x2eb   :  { %v1337_v59 = vsub.f32 1.5, %v1336_v2  ;;  %v4774_v2 = vperm.slane %v1359_v13, 0 }
 0x2ec   :  { %v3702_v47 = vpop.eup %3701 }
 0x2ed   :  { %v1338_v28 = vmul.f32 %v3700_v52, %v1337_v59  ;;  %v1344_v31 = vmul.f32 %v3702_v47, %v1332_v33  ;;  %1989 = vmatpush.bf16.msrb.mxu3 %v4531_v15  ;;  %vm1350_vm8 = vweird.f32 %v3702_v47 }
 0x2ee   :  { %1888 = vmatpush.bf16.msra.mxu2 %v3623_v16  ;;  %vm1351_vm10 = vmor %vm1349_vm9, %vm1350_vm8 }
 0x2ef   :  { %v1342_v25 = vsel %vm1341_vm7, %v3700_v52, %v1338_v28  ;;  %v1345_v30 = vmul.f32 %v3702_v47, %v1344_v31  ;;  %v1369_v52 = vperm.slane %v425_v57, 3 }
 0x2f0   :  { %v1353_v36 = vmul.f32 %v1342_v25, %v4709_v23  ;;  %v1355_v6 = vmul.f32 %v1342_v25, %v4711_v7 }
 0x2f1   :  { %v1346_v16 = vmul.f32 0.5, %v1345_v30  ;;  %1990 = vmatpush.bf16.msrb.mxu3 %v4539_v24 }
 0x2f2   :  { %1889 = vmatpush.bf16.msra.mxu2 %v3622_v29  ;;  %v1364_v10 = vmul.f32 %v4762_v63, %v1353_v36  ;;  %v1366_v5 = vmul.f32 %v4762_v63, %v1355_v6 }
 0x2f3   :  { %v1347_v54 = vsub.f32 1.5, %v1346_v16 }
 0x2f4   :  { %v1374_v15 = vadd.f32 %v4767_v44, %v1364_v10  ;;  %v1376_v23 = vadd.f32 %v4767_v44, %v1366_v5 }
 0x2f5   :  { %v1348_v7 = vmul.f32 %v3702_v47, %v1347_v54  ;;  %1991 = vmatpush.bf16.msrb.mxu3 %v4555_v38 }
 0x2f6   :  { %1890 = vmatpush.bf16.msra.mxu2 %v3621_v19  ;;  %v1380_v29 = vmax.f32 %v1376_v23, 0.0  ;;  %v1378_v3 = vmax.f32 %v1374_v15, 0.0  ;;  %v4780_v19 = vperm.slane %v1369_v52, 1 }
 0x2f7   :  { %v1352_v59 = vsel %vm1351_vm10, %v3702_v47, %v1348_v7  ;;  %v3363_v7 = vld [vmem:[#allocation25] sm:$0xf] }
 0x2f8   :  { %v1354_v24 = vmul.f32 %v1352_v59, %v4732_v50  ;;  %v1356_v40 = vmul.f32 %v1352_v59, %v4735_v35  ;;  %v1382_v57 = vpack.c.bf16 %v1380_v29, %v1378_v3  ;;  %v3637_v29 = vld [vmem:[#allocation25] sm:$0x30] }
 0x2f9   :  { %2087 = vmatpush.bf16.msra.mxu3 %v4557_v42 }
 0x2fa   :  { %1891 = vmatpush.bf16.msra.mxu2 %v3620_v48  ;;  %v1365_v28 = vmul.f32 %v4774_v2, %v1354_v24  ;;  %v1367_v33 = vmul.f32 %v4774_v2, %v1356_v40  ;;  %1488 = vmatmul.bf16.vlgmr.msrb.gmra.mxu1 %v1382_v57  ;;  %v3364_v24 = vor.u32 %v3637_v29, %v3363_v7  ;;  %v1553_v57 = vld [vmem:[#allocation27] sm:$0xff] }
 0x2fb   :  { %1956 = vmatpush.bf16.msrb.mxu1 %v4495_v55 }
 0x2fc   :  { %v1375_v38 = vadd.f32 %v4780_v19, %v1365_v28  ;;  %v1377_v42 = vadd.f32 %v4780_v19, %v1367_v33  ;;  %v1554_v28 = vld [vmem:[#allocation27 + $0x8] sm:$0xf]  ;;  %v5106_v33 = vld [vmem:[#allocation46_spill] sm:$0xff] }
 0x2fd   :  { %2088 = vmatpush.bf16.msra.mxu3 %v4598_v17 }
 0x2fe   :  { %v1381_v47 = vmax.f32 %v1377_v42, 0.0  ;;  %v1379_v50 = vmax.f32 %v1375_v38, 0.0  ;;  %v1955_v38 = vpack.c.bf16 %v1554_v28, %v1553_v57 }
 0x2ff   :  { %1957 = vmatpush.bf16.msrb.mxu1 %v4498_v56 }
 0x300   :  { %v1383_v35 = vpack.c.bf16 %v1381_v47, %v1379_v50  ;;  %v5107_v50 = vld [vmem:[#allocation47_spill] sm:$0xff] }
 0x301   :  { %2089 = vmatpush.bf16.msra.mxu3 %v4610_v27 }
 0x302   :  { %1502 = vmatmul.bf16.vlgmr.msrb.gmra.mxu2 %v1383_v35 }
 0x303   :  { %1970 = vmatpush.bf16.msrb.mxu2 %v4485_v51  ;;  %1958 = vmatpush.bf16.msrb.mxu1 %v4507_v61  ;;  %v5104_v51 = vld [vmem:[#allocation53_spill] sm:$0xff] }
 0x305   :  { %2090 = vmatpush.bf16.msra.mxu3 %v4622_v41 }
 0x307   :  { %1971 = vmatpush.bf16.msrb.mxu2 %v4490_v53  ;;  %1959 = vmatpush.bf16.msrb.mxu1 %v4516_v1  ;;  %v5105_v53 = vld [vmem:[#allocation55_spill] sm:$0xff] }
 0x309   :  { %2091 = vmatpush.bf16.msra.mxu3 %v4630_v8 }
 0x30a   :  { %1782 = vmatmul.bf16.vlgmr.msra.gmra.mxu1 %v4754_v32 }
 0x30b   :  { %1972 = vmatpush.bf16.msrb.mxu2 %v4501_v58  ;;  %1960 = vmatpush.bf16.msrb.mxu1 %v4525_v11 }
 0x30d   :  { %2092 = vmatpush.bf16.msra.mxu3 %v4635_v18 }
 0x30f   :  { %1973 = vmatpush.bf16.msrb.mxu2 %v4510_v62  ;;  %1961 = vmatpush.bf16.msrb.mxu1 %v4594_v14 }
 0x311   :  { %2093 = vmatpush.bf16.msra.mxu3 %v4639_v26 }
 0x312   :  { %1892 = vmatmul.bf16.vlgmr.msra.gmra.mxu2 %v4749_v60 }
 0x313   :  { %1974 = vmatpush.bf16.msrb.mxu2 %v4519_v4  ;;  %1962 = vmatpush.bf16.msrb.mxu1 %v4605_v22 }
 0x315   :  { %2094 = vmatpush.bf16.msra.mxu3 %v4642_v43 }
 0x317   :  { %1975 = vmatpush.bf16.msrb.mxu2 %v4528_v12  ;;  %1963 = vmatpush.bf16.msrb.mxu1 %v4618_v39 }
 0x31b   :  { %1976 = vmatpush.bf16.msrb.mxu2 %v4536_v20 }
 0x31f   :  { %1977 = vmatpush.bf16.msrb.mxu2 %v4546_v34 }
 0x322   :  { %1978 = vmatmul.bf16.vlgmr.msrb.gmra.mxu2 %v1955_v38 }
 0x323   :  { %2073 = vmatpush.bf16.msra.mxu2 %v4552_v37 }
 0x327   :  { %2074 = vmatpush.bf16.msra.mxu2 %v4568_v45 }
 0x32b   :  { %2075 = vmatpush.bf16.msra.mxu2 %v4578_v49 }
 0x32f   :  { %2076 = vmatpush.bf16.msra.mxu2 %v4584_v0 }
 0x333   :  { %2077 = vmatpush.bf16.msra.mxu2 %v4591_v9 }
 0x337   :  { %2078 = vmatpush.bf16.msra.mxu2 %v4602_v21 }
 0x33b   :  { %2079 = vmatpush.bf16.msra.mxu2 %v5104_v51 }
 0x33f   :  { %2080 = vmatpush.bf16.msra.mxu2 %v5105_v53  ;;  %v5108_v53 = vld [vmem:[#allocation48_spill] sm:$0xff] }
 0x340   :  { %v4819_v55 = vpop.f32.mrf.mxu2 }
 0x348   :  { %v4821_v56 = vpop.f32.mrf.mxu2 }
 0x350   :  { %v4823_v58 = vpop.f32.mrf.mxu2  ;;  %v1769_v21 = vpop.f32.mrf.mxu0 }
 0x358   :  { %v4825_v61 = vpop.f32.mrf.mxu2  ;;  %v1771_v36 = vpop.f32.mrf.mxu0 }
 0x35b   :  { %v1907_v45 = vpop.f32.mrf.mxu3 }
 0x363   :  { %v1909_v41 = vpop.f32.mrf.mxu3 }
 0x377   :  { %v1489_v62 = vpop.f32.mrf.mxu1 }
 0x37f   :  { %v1491_v4 = vpop.f32.mrf.mxu1 }
 0x385   :  { %v1503_v1 = vpop.f32.mrf.mxu2 }
 0x386   :  { %v1504_v20 = vadd.f32 %v1503_v1, %v1489_v62 }
 0x387   :  { %v1783_v14 = vpop.f32.mrf.mxu1 }
 0x388   :  { %v1784_v23 = vadd.f32 %v1783_v14, %v1769_v21  ;;  %v5114_v21 = vld [vmem:[#allocation57_spill] sm:$0xff] }
 0x38d   :  { %v1505_v11 = vpop.f32.mrf.mxu2 }
 0x38e   :  { %v1506_v12 = vadd.f32 %v1505_v11, %v1491_v4  ;;  %v5109_v4 = vld [vmem:[#allocation49_spill] sm:$0xff]  ;;  %v5110_v11 = vld [vmem:[#allocation50_spill] sm:$0xff] }
 0x38f   :  { %v1785_v60 = vpop.f32.mrf.mxu1 }
 0x390   :  { %v1508_v34 = vsel %vm822_vm2, %v1506_v12, 0.0  ;;  %v1786_v10 = vadd.f32 %v1785_v60, %v1771_v36 }
 0x391   :  { %v1509_v37 = vadd.f32 %v1508_v34, %v1504_v20  ;;  %v5111_v34 = vld [vmem:[#allocation51_spill] sm:$0xff] }
 0x393   :  { %v1510_v49 = vrot.slane %v1509_v37, 4 }
 0x395   :  { %v1511_v0 = vadd.f32 %v1510_v49, %v1509_v37  ;;  %v1893_v9 = vpop.f32.mrf.mxu2  ;;  %v5112_v49 = vld [vmem:[#allocation52_spill] sm:$0xff] }
 0x396   :  { %v1908_v39 = vadd.f32 %v1907_v45, %v1893_v9  ;;  %v458_v9 = vld [vmem:[#allocation18] sm:$0x3] }
 0x397   :  { %v1512_v17 = vrot.slane %v1511_v0, 2 }
 0x398   :  { %v1914_v32 = vrot.slane %v1908_v39, 4 }
 0x399   :  { %v1513_v22 = vadd.f32 %v1512_v17, %v1511_v0  ;;  %v5113_v17 = vld [vmem:[#allocation54_spill] sm:$0xff] }
 0x39a   :  { %v1919_v15 = vsel %vm1656_vm4, %v1786_v10, %v1914_v32  ;;  %v5121_v10 = vld [vmem:[#allocation69_spill] sm:$0xff] }
 0x39b   :  { %v1514_v27 = vrot.slane %v1513_v22, 1  ;;  %v1920_v59 = vpack.c.bf16 %v1919_v15, %v1784_v23  ;;  %v5122_v15 = vld [vmem:[#allocation56_spill] sm:$0xff] }
 0x39c   :  { %v2068_v23 = vmul.f32 %v1553_v57, %v5122_v15 }
 0x39d   :  { %v1515_v8 = vadd.f32 %v1514_v27, %v1513_v22  ;;  %v1895_v18 = vpop.f32.mrf.mxu2  ;;  %v4842_v22 = vperm.slane %v458_v9, 0 }
 0x39e   :  { %v1910_v26 = vadd.f32 %v1909_v41, %v1895_v18  ;;  %v5115_v18 = vld [vmem:[#allocation58_spill] sm:$0xff] }
 0x39f   :  { %v1516_v43 = vmul.f32 0.1, %v1515_v8  ;;  %v4844_v8 = vperm.slane %v458_v9, 1 }
 0x3a0   :  { %v1915_v31 = vrot.slane %v1910_v26, 4 }
 0x3a1   :  { %v1517_v25 = vsub.f32 %v1504_v20, %v1516_v43  ;;  %v1518_v30 = vsub.f32 %v1506_v12, %v1516_v43 }
 0x3a2   :  { %v1916_v6 = vsel %vm1656_vm4, %v1914_v32, %v1915_v31  ;;  %v5116_v31 = vld [vmem:[#allocation59_spill] sm:$0xff] }
 0x3a3   :  { %v1519_v48 = vmul.f32 %v1517_v25, %v1517_v25  ;;  %v1520_v16 = vmul.f32 %v1518_v30, %v1518_v30  ;;  %v1921_v5 = vpack.c.bf16 %v1916_v6, %v1916_v6 }
 0x3a5   :  { %v1521_v13 = vsel %vm822_vm2, %v1520_v16, 0.0  ;;  %v1938_v54 = vsel %vm1656_vm4, %v1921_v5, 0  ;;  %v5120_v16 = vld [vmem:[#allocation67_spill] sm:$0xff] }
 0x3a6   :  { %v1522_v52 = vadd.f32 %v1521_v13, %v1519_v48  ;;  %1946 = vmatpush.bf16.msrb.mxu0 %v1938_v54  ;;  %v5119_v48 = vld [vmem:[#allocation65_spill] sm:$0xff] }
 0x3a7   :  { %v3698_v13 = vld [vmem:[%s5019_s23] ss:$0 sm:$0xff]  ;;  %s4236_s23 = smov [#allocation30]  }
 0x3a8   :  { %v1523_v3 = vrot.slane %v1522_v52, 4  ;;  %s2762_s30 = sshll.u32 %s4236_s23, 4  ;;  %s2763_s30 = int_to_ptr.vmem [resolvable:$true] %s2762_s30 }
 0x3aa   :  { %v1524_v40 = vadd.f32 %v1523_v3, %v1522_v52  ;;  %1947 = vmatpush.bf16.msrb.mxu0 %v1920_v59  ;;  %v2069_v52 = vmul.f32 %v1554_v28, %v5122_v15 }
 0x3ac   :  { %v1525_v42 = vrot.slane %v1524_v40, 2 }
 0x3ad   :  { %3365 = vmatmul.msk.bf16.vlgmr.msrb.gmra.mxu0 %vm1933_vm11, %v3364_v24 }
 0x3ae   :  { %1998 = vmatpush.bf16.msra.mxu0 %v5106_v33  ;;  %v1526_v47 = vadd.f32 %v1525_v42, %v1524_v40  ;;  %v1979_v33 = vpop.f32.mrf.mxu2 }
 0x3b0   :  { %v1527_v35 = vrot.slane %v1526_v47, 1 }
 0x3b2   :  { %1999 = vmatpush.bf16.msra.mxu0 %v5107_v50  ;;  %v1528_v51 = vadd.f32 %v1527_v35, %v1526_v47 }
 0x3b4   :  { %v1529_v62 = vmul.f32 0.1, %v1528_v51 }
 0x3b6   :  { %2000 = vmatpush.bf16.msra.mxu0 %v5108_v53  ;;  %v1530_v1 = vadd.f32 1e-05, %v1529_v62 }
 0x3b8   :  { %3703 = vrsqrt.f32 %v1530_v1  ;;  %vm1537_vm13 = vweird.f32 %v1530_v1 }
 0x3ba   :  { %2001 = vmatpush.bf16.msra.mxu0 %v5109_v4 }
 0x3be   :  { %2002 = vmatpush.bf16.msra.mxu0 %v5110_v11  ;;  %v3704_v12 = vpop.eup %3703 }
 0x3bf   :  { %v1532_v20 = vmul.f32 %v3704_v12, %v1530_v1  ;;  %vm1538_vm12 = vweird.f32 %v3704_v12 }
 0x3c0   :  { %vm1539_vm14 = vmor %vm1537_vm13, %vm1538_vm12 }
 0x3c1   :  { %v1533_v37 = vmul.f32 %v3704_v12, %v1532_v20 }
 0x3c2   :  { %2003 = vmatpush.bf16.msra.mxu0 %v5111_v34 }
 0x3c3   :  { %v1534_v45 = vmul.f32 0.5, %v1533_v37 }
 0x3c5   :  { %v1535_v0 = vsub.f32 1.5, %v1534_v45 }
 0x3c6   :  { %2004 = vmatpush.bf16.msra.mxu0 %v5112_v49 }
 0x3c7   :  { %v1536_v14 = vmul.f32 %v3704_v12, %v1535_v0 }
 0x3c9   :  { %v1540_v27 = vsel %vm1539_vm14, %v3704_v12, %v1536_v14 }
 0x3ca   :  { %2005 = vmatpush.bf16.msra.mxu0 %v5113_v17  ;;  %v1541_v39 = vmul.f32 %v1540_v27, %v1517_v25  ;;  %v1542_v41 = vmul.f32 %v1540_v27, %v1518_v30  ;;  %v5117_v25 = vld [vmem:[#allocation61_spill] sm:$0xff]  ;;  %v5118_v30 = vld [vmem:[#allocation63_spill] sm:$0xff] }
 0x3cc   :  { %v1544_v26 = vmul.f32 %v4842_v22, %v1541_v39  ;;  %v1545_v43 = vmul.f32 %v4842_v22, %v1542_v41 }
 0x3cd   :  { %2006 = vmatmul.bf16.vlgmr.msra.gmra.mxu0 %v1955_v38  ;;  %v1981_v38 = vpop.f32.mrf.mxu2 }
 0x3ce   :  { %2185 = vmatpush.bf16.msrb.mxu0 %v5114_v21  ;;  %v1547_v60 = vadd.f32 %v4844_v8, %v1544_v26  ;;  %v1548_v32 = vadd.f32 %v4844_v8, %v1545_v43  ;;  %v5123_v43 = vld [vmem:[#allocation60_spill] sm:$0xff] }
 0x3d0   :  { %v1549_v36 = vmax.f32 %v1547_v60, 0.0  ;;  %v1550_v6 = vmax.f32 %v1548_v32, 0.0 }
 0x3d2   :  { %2186 = vmatpush.bf16.msrb.mxu0 %v5115_v18  ;;  %1551 = vst [vmem:[#allocation31] sm:$0xff] %v1549_v36  ;;  %v3638_v18 = vld [vmem:[%s5016_s20] sm:$0xff] }
 0x3d3   :  { %1552 = vst [vmem:[#allocation31 + $0x8] sm:$0x3] %v1550_v6 }
 0x3d4   :  { %2783 = dma.vmem_to_hbm [thread:$0]  %s2776_s13, 256, %s2778_s28, [#allocation32], %s5071_s10, %s5071_s10, %s4215_s0  }
 0x3d6   :  { %2187 = vmatpush.bf16.msrb.mxu0 %v5116_v31 }
 0x3da   :  { %2188 = vmatpush.bf16.msrb.mxu0 %v5117_v25  ;;  %v5124_v25 = vld [vmem:[#allocation62_spill] sm:$0xff] }
 0x3de   :  { %2189 = vmatpush.bf16.msrb.mxu0 %v5118_v30 }
 0x3e2   :  { %2190 = vmatpush.bf16.msrb.mxu0 %v5119_v48 }
 0x3e6   :  { %2191 = vmatpush.bf16.msrb.mxu0 %v5120_v16 }
 0x3ea   :  { %2192 = vmatpush.bf16.msrb.mxu0 %v5121_v10 }
 0x42a   :  { %v1949_v5 = vpop.f32.mrf.mxu0 }
 0x42b   :  { %v1950_v54 = vadd.f32 %v3698_v13, %v1949_v5 }
 0x42d   :  { %v2070_v3 = vadd.f32 %v2068_v23, %v1950_v54 }
 0x432   :  { %v1951_v7 = vpop.f32.mrf.mxu0 }
 0x433   :  { %v1952_v29 = vadd.f32 %v3698_v13, %v1951_v7 }
 0x435   :  { %v1954_v59 = vpack.c.bf16 %v1952_v29, %v1950_v54  ;;  %v2071_v24 = vadd.f32 %v2069_v52, %v1952_v29  ;;  %v5125_v54 = vld [vmem:[#allocation64_spill] sm:$0xff]  ;;  %v5126_v29 = vld [vmem:[#allocation66_spill] sm:$0xff] }
 0x437   :  { %v2072_v40 = vpack.c.bf16 %v2071_v24, %v2070_v3  ;;  %1964 = vmatmul.bf16.vlgmr.msrb.gmra.mxu1 %v1954_v59  ;;  %1992 = vmatmul.bf16.vlgmr.msrb.gmra.mxu3 %v1954_v59  ;;  %v3639_v24 = vld [vmem:[%s5016_s20 + $0x8] sm:$0xff]  ;;  %s337_s20 = sld [smem:[#allocation2]] }
 0x439   :  { %2081 = vmatmul.bf16.vlgmr.msra.gmra.mxu2 %v2072_v40 }
 0x43d   :  { %s2256_s1 = sadd.f32 1.0, %s337_s20 }
 0x43e   :  { %s5133_s20 = sld [smem:[#allocation83_spill]] }
 0x447   :  { %2095 = vmatmul.bf16.vlgmr.msra.gmra.mxu3 %v2072_v40 }
 0x44a   :  { %v2007_v42 = vpop.f32.mrf.mxu0 }
 0x452   :  { %v2009_v57 = vpop.f32.mrf.mxu0 }
 0x4b4   :  { %v1965_v47 = vpop.f32.mrf.mxu1 }
 0x4b5   :  { %v1980_v21 = vadd.f32 %v1979_v33, %v1965_v47 }
 0x4ba   :  { %v1993_v50 = vpop.f32.mrf.mxu3 }
 0x4bb   :  { %v2008_v51 = vadd.f32 %v2007_v42, %v1993_v50 }
 0x4bc   :  { %v2082_v35 = vpop.f32.mrf.mxu2  ;;  %v1967_v28 = vpop.f32.mrf.mxu1 }
 0x4bd   :  { %v2014_v4 = vrot.slane %v2008_v51, 4  ;;  %v1982_v20 = vadd.f32 %v1981_v38, %v1967_v28  ;;  %v5127_v38 = vld [vmem:[#allocation68_spill] sm:$0xff] }
 0x4bf   :  { %v2019_v17 = vsel %vm1656_vm4, %v1982_v20, %v2014_v4 }
 0x4c0   :  { %v2020_v39 = vpack.c.bf16 %v2019_v17, %v1980_v21 }
 0x4c2   :  { %v1995_v53 = vpop.f32.mrf.mxu3 }
 0x4c3   :  { %v2010_v62 = vadd.f32 %v2009_v57, %v1995_v53  ;;  %v5128_v57 = vld [vmem:[#allocation70_spill] sm:$0xff] }
 0x4c4   :  { %v2084_v1 = vpop.f32.mrf.mxu2 }
 0x4c5   :  { %v2015_v11 = vrot.slane %v2010_v62, 4  ;;  %v2101_v12 = vsel %vm1656_vm4, %v2084_v1, 0.0 }
 0x4c6   :  { %v2102_v34 = vadd.f32 %v2101_v12, %v2082_v35 }
 0x4c7   :  { %v2016_v37 = vsel %vm1656_vm4, %v2014_v4, %v2015_v11 }
 0x4c8   :  { %v2103_v45 = vrot.slane %v2102_v34, 4  ;;  %v2021_v49 = vpack.c.bf16 %v2016_v37, %v2016_v37  ;;  %v5129_v37 = vld [vmem:[#allocation71_spill] sm:$0xff] }
 0x4ca   :  { %v2104_v0 = vadd.f32 %v2103_v45, %v2102_v34  ;;  %v2096_v9 = vpop.f32.mrf.mxu3  ;;  %v2043_v14 = vsel %vm1656_vm4, %v2021_v49, 0 }
 0x4cb   :  { %2051 = vmatpush.bf16.msra.mxu1 %v2043_v14 }
 0x4cc   :  { %v2105_v27 = vrot.slane %v2104_v0, 2 }
 0x4ce   :  { %v2106_v41 = vadd.f32 %v2105_v27, %v2104_v0 }
 0x4cf   :  { %2052 = vmatpush.bf16.msra.mxu1 %v2020_v39 }
 0x4d0   :  { %v2107_v26 = vrot.slane %v2106_v41, 1 }
 0x4d2   :  { %v2108_v60 = vadd.f32 %v2107_v26, %v2106_v41  ;;  %3374 = vmatmul.msk.bf16.vlgmr.msra.gmra.mxu1 %vm1933_vm11, %v3638_v18  ;;  %v2098_v32 = vpop.f32.mrf.mxu3  ;;  %v3434_v41 = vld [vmem:[#allocation7 + $0x70] sm:$0xf]  ;;  %v3655_v18 = vld [vmem:[#allocation7 + $0x74] sm:$0xf0] }
 0x4d3   :  { %2199 = vmatpush.bf16.msrb.mxu1 %v5123_v43  ;;  %v2109_v31 = vsel %vm1656_vm4, %v2098_v32, 0.0  ;;  %v3654_v43 = vld [vmem:[#allocation7 + $0x74] sm:$0xf] }
 0x4d4   :  { %v2117_v36 = vmul.f32 0.083333336, %v2108_v60  ;;  %v2110_v6 = vadd.f32 %v2109_v31, %v2096_v9  ;;  %v3436_v60 = vld [vmem:[#allocation7 + $0x78] sm:$0xf0] }
 0x4d5   :  { %v3439_v31 = vor.u32 %v3654_v43, %v3436_v60  ;;  %v3404_v43 = vld [vmem:[#allocation7 + $0x38] sm:$0xf0]  ;;  %v3645_v60 = vld [vmem:[#allocation7 + $0x24] sm:$0xf0] }
 0x4d6   :  { %v4873_v30 = vsub.f32 %v2082_v35, %v2117_v36  ;;  %v4875_v48 = vsub.f32 %v2084_v1, %v2117_v36  ;;  %v2111_v16 = vrot.slane %v2110_v6, 4  ;;  %v3426_v36 = vld [vmem:[#allocation7 + $0x60] sm:$0xf] }
 0x4d7   :  { %2200 = vmatpush.bf16.msrb.mxu1 %v5124_v25  ;;  %2417 = vmatpush.bf16.msrb.mxu3 %v3439_v31  ;;  %v3396_v31 = vld [vmem:[#allocation7 + $0x28] sm:$0xf0] }
 0x4d8   :  { %v2123_v10 = vmul.f32 %v4873_v30, %v4873_v30  ;;  %v2125_v5 = vmul.f32 %v4875_v48, %v4875_v48  ;;  %v2112_v13 = vadd.f32 %v2111_v16, %v2110_v6  ;;  %v3653_v6 = vld [vmem:[#allocation7 + $0x64] sm:$0xf0] }
 0x4d9   :  { %v3427_v16 = vor.u32 %v3653_v6, %v3426_v36  ;;  %v3643_v6 = vld [vmem:[#allocation7 + $0x14] sm:$0xf0] }
 0x4da   :  { %v2127_v15 = vsel %vm1656_vm4, %v2125_v5, 0.0  ;;  %v2113_v23 = vrot.slane %v2112_v13, 2  ;;  %v3428_v5 = vld [vmem:[#allocation7 + $0x68] sm:$0xf0] }
 0x4db   :  { %2201 = vmatpush.bf16.msrb.mxu1 %v5125_v54  ;;  %v2128_v52 = vadd.f32 %v2127_v15, %v2123_v10  ;;  %v3652_v10 = vld [vmem:[#allocation7 + $0x64] sm:$0xf]  ;;  %v3418_v54 = vld [vmem:[#allocation7 + $0x50] sm:$0xf]  ;;  %v3651_v15 = vld [vmem:[#allocation7 + $0x54] sm:$0xf0] }
 0x4dc   :  { %v2114_v7 = vadd.f32 %v2113_v23, %v2112_v13  ;;  %v3431_v13 = vor.u32 %v3652_v10, %v3428_v5  ;;  %v3388_v10 = vld [vmem:[#allocation7 + $0x18] sm:$0xf0] }
 0x4dd   :  { %v2129_v3 = vrot.slane %v2128_v52, 4 }
 0x4de   :  { %v2115_v59 = vrot.slane %v2114_v7, 1  ;;  %2418 = vmatpush.bf16.msrb.mxu3 %v3431_v13  ;;  %v3378_v13 = vld [vmem:[#allocation7] sm:$0xf] }
 0x4df   :  { %2202 = vmatpush.bf16.msrb.mxu1 %v5126_v29  ;;  %v2130_v40 = vadd.f32 %v2129_v3, %v2128_v52  ;;  %v3650_v52 = vld [vmem:[#allocation7 + $0x54] sm:$0xf]  ;;  %v3419_v3 = vor.u32 %v3651_v15, %v3418_v54  ;;  %v3641_v54 = vld [vmem:[#allocation7 + $0x4] sm:$0xf0]  ;;  %v3640_v15 = vld [vmem:[#allocation7 + $0x4] sm:$0xf] }
 0x4e0   :  { %v2116_v33 = vadd.f32 %v2115_v59, %v2114_v7  ;;  %v3420_v7 = vld [vmem:[#allocation7 + $0x58] sm:$0xf0] }
 0x4e1   :  { %v2131_v42 = vrot.slane %v2130_v40, 2 }
 0x4e2   :  { %v2118_v47 = vmul.f32 0.083333336, %v2116_v33  ;;  %3375 = vmatmul.msk.bf16.gmra.mxu1 %vm1933_vm11, %v3639_v24  ;;  %v3410_v33 = vld [vmem:[#allocation7 + $0x40] sm:$0xf] }
 0x4e3   :  { %2203 = vmatpush.bf16.msrb.mxu1 %v5127_v38  ;;  %v2132_v50 = vadd.f32 %v2131_v42, %v2130_v40  ;;  %v3423_v40 = vor.u32 %v3650_v52, %v3420_v7  ;;  %v3649_v38 = vld [vmem:[#allocation7 + $0x44] sm:$0xf0]  ;;  %v3648_v42 = vld [vmem:[#allocation7 + $0x44] sm:$0xf]  ;;  %v3380_v52 = vld [vmem:[#allocation7 + $0x8] sm:$0xf0] }
 0x4e4   :  { %v4889_v35 = vsub.f32 %v2096_v9, %v2118_v47  ;;  %v4891_v51 = vsub.f32 %v2098_v32, %v2118_v47  ;;  %v3412_v47 = vld [vmem:[#allocation7 + $0x48] sm:$0xf0]  ;;  %v3383_v7 = vor.u32 %v3640_v15, %v3380_v52 }
 0x4e5   :  { %v2133_v53 = vrot.slane %v2132_v50, 1  ;;  %2419 = vmatpush.bf16.msrb.mxu3 %v3423_v40 }
 0x4e6   :  { %v2124_v28 = vmul.f32 %v4889_v35, %v4889_v35  ;;  %v2126_v62 = vmul.f32 %v4891_v51, %v4891_v51 }
 0x4e7   :  { %2204 = vmatpush.bf16.msrb.mxu1 %v5128_v57  ;;  %v2134_v1 = vadd.f32 %v2133_v53, %v2132_v50 }
 0x4e8   :  { %v2135_v4 = vsel %vm1656_vm4, %v2126_v62, 0.0  ;;  %v3411_v62 = vor.u32 %v3649_v38, %v3410_v33 }
 0x4e9   :  { %v2143_v11 = vmul.f32 0.083333336, %v2134_v1  ;;  %v2136_v12 = vadd.f32 %v2135_v4, %v2124_v28 }
 0x4eb   :  { %2205 = vmatpush.bf16.msrb.mxu1 %v4738_v46  ;;  %v2145_v20 = vadd.f32 1e-05, %v2143_v11  ;;  %v2137_v34 = vrot.slane %v2136_v12, 4  ;;  %v3435_v46 = vor.u32 %v3655_v18, %v3434_v41  ;;  %v3402_v41 = vld [vmem:[#allocation7 + $0x30] sm:$0xf] }
 0x4ec   :  { %v3647_v18 = vld [vmem:[#allocation7 + $0x34] sm:$0xf0] }
 0x4ed   :  { %3705 = vrsqrt.f32 %v2145_v20  ;;  %v2138_v45 = vadd.f32 %v2137_v34, %v2136_v12  ;;  %2398 = vmatpush.bf16.msrb.mxu2 %v3435_v46  ;;  %vm2153_vm0 = vweird.f32 %v2145_v20  ;;  %v3403_v46 = vor.u32 %v3647_v18, %v3402_v41 }
 0x4ef   :  { %2206 = vmatpush.bf16.msrb.mxu1 %v5129_v37  ;;  %v2139_v49 = vrot.slane %v2138_v45, 2 }
 0x4f1   :  { %v2140_v0 = vadd.f32 %v2139_v49, %v2138_v45  ;;  %2399 = vmatpush.bf16.msrb.mxu2 %v3427_v16 }
 0x4f3   :  { %v3706_v9 = vpop.eup %3705  ;;  %v2141_v14 = vrot.slane %v2140_v0, 1 }
 0x4f4   :  { %v2148_v17 = vmul.f32 %v3706_v9, %v2145_v20  ;;  %vm2154_vm15 = vweird.f32 %v3706_v9 }
 0x4f5   :  { %v2142_v21 = vadd.f32 %v2141_v14, %v2140_v0  ;;  %vm2155_vm1 = vmor %vm2153_vm0, %vm2154_vm15  ;;  %2400 = vmatpush.bf16.msrb.mxu2 %v3419_v3  ;;  %v2257_v3 = vstv %s2256_s1  ;;  %s2764_s1 = sshll.u32 %s5133_s20, 4  ;;  %s2765_s1 = int_to_ptr.hbm [resolvable:$true] %s2764_s1 }
 0x4f6   :  { %v2149_v27 = vmul.f32 %v3706_v9, %v2148_v17 }
 0x4f7   :  { %v2144_v39 = vmul.f32 0.083333336, %v2142_v21 }
 0x4f8   :  { %v2150_v26 = vmul.f32 0.5, %v2149_v27 }
 0x4f9   :  { %v2146_v32 = vadd.f32 1e-05, %v2144_v39  ;;  %2401 = vmatpush.bf16.msrb.mxu2 %v3411_v62 }
 0x4fa   :  { %v2151_v25 = vsub.f32 1.5, %v2150_v26  ;;  %v3646_v26 = vld [vmem:[#allocation7 + $0x34] sm:$0xf] }
 0x4fb   :  { %3707 = vrsqrt.f32 %v2146_v32  ;;  %vm2163_vm3 = vweird.f32 %v2146_v32 }
 0x4fc   :  { %v2152_v23 = vmul.f32 %v3706_v9, %v2151_v25  ;;  %v3642_v25 = vld [vmem:[#allocation7 + $0x14] sm:$0xf] }
 0x4fd   :  { %2402 = vmatpush.bf16.msrb.mxu2 %v3403_v46  ;;  %v3391_v5 = vor.u32 %v3642_v25, %v3388_v10 }
 0x4fe   :  { %v2156_v29 = vsel %vm2155_vm1, %v3706_v9, %v2152_v23  ;;  %v3379_v23 = vor.u32 %v3641_v54, %v3378_v13 }
 0x4ff   :  { %v2167_v59 = vmul.f32 %v2156_v29, %v4873_v30  ;;  %v2169_v24 = vmul.f32 %v2156_v29, %v4875_v48  ;;  %v3415_v48 = vor.u32 %v3648_v42, %v3412_v47  ;;  %v3697_v29 = vld [vmem:[%s5130_s16] ss:$0 sm:$0xff]  ;;  %v3718_v47 = vld [vmem:[%s5077_s8 + $0x8] sm:$0xff] }
 0x500   :  { %v1168_v40 = vadd.f32 %v3697_v29, %v4819_v55  ;;  %v1170_v55 = vadd.f32 %v3697_v29, %v4823_v58 }
 0x501   :  { %v3708_v50 = vpop.eup %3707  ;;  %v2171_v57 = vmul.f32 %v2167_v59, %v4762_v63  ;;  %v2173_v53 = vmul.f32 %v2169_v24, %v4762_v63  ;;  %2420 = vmatpush.bf16.msrb.mxu3 %v3415_v48  ;;  %v3717_v59 = vld [vmem:[%s5077_s8] sm:$0xff] }
 0x502   :  { %v2158_v28 = vmul.f32 %v3708_v50, %v2146_v32  ;;  %vm2164_vm2 = vweird.f32 %v3708_v50  ;;  %v3644_v32 = vld [vmem:[#allocation7 + $0x24] sm:$0xf]  ;;  %v2258_v24 = vmul.f32 %v3717_v59, %v2257_v3 }
 0x503   :  { %v2175_v1 = vadd.f32 %v2171_v57, %v4767_v44  ;;  %v2177_v30 = vadd.f32 %v2173_v53, %v4767_v44  ;;  %vm2165_vm5 = vmor %vm2163_vm3, %vm2164_vm2  ;;  %v3399_v36 = vor.u32 %v3644_v32, %v3396_v31  ;;  %v1169_v57 = vadd.f32 %v3697_v29, %v4821_v56  ;;  %v3720_v56 = vld [vmem:[%s5077_s8 + $0x18] sm:$0xff] }
 0x504   :  { %v2159_v4 = vmul.f32 %v3708_v50, %v2158_v28 }
 0x505   :  { %v2181_v11 = vmax.f32 %v2177_v30, 0.0  ;;  %v2179_v12 = vmax.f32 %v2175_v1, 0.0  ;;  %v3719_v30 = vld [vmem:[%s5077_s8 + $0x10] sm:$0xff] }
 0x506   :  { %v2160_v20 = vmul.f32 0.5, %v2159_v4  ;;  %v2260_v48 = vmul.f32 %v3719_v30, %v2257_v3 }
 0x507   :  { %v2183_v34 = vpack.c.bf16 %v2181_v11, %v2179_v12 }
 0x508   :  { %v2161_v37 = vsub.f32 1.5, %v2160_v20  ;;  %v2261_v20 = vmul.f32 %v3720_v56, %v2257_v3 }
 0x509   :  { %2193 = vmatmul.bf16.vlgmr.msrb.gmra.mxu0 %v2183_v34  ;;  %v1171_v34 = vadd.f32 %v3697_v29, %v4825_v61 }
 0x50a   :  { %v2162_v63 = vmul.f32 %v3708_v50, %v2161_v37 }
 0x50c   :  { %v2166_v45 = vsel %vm2165_vm5, %v3708_v50, %v2162_v63  ;;  %v2259_v50 = vmul.f32 %v3718_v47, %v2257_v3 }
 0x50d   :  { %v2168_v49 = vmul.f32 %v2166_v45, %v4889_v35  ;;  %v2170_v44 = vmul.f32 %v2166_v45, %v4891_v51  ;;  %v3407_v35 = vor.u32 %v3646_v26, %v3404_v43  ;;  %v3394_v51 = vld [vmem:[#allocation7 + $0x20] sm:$0xf] }
 0x50f   :  { %v2172_v0 = vmul.f32 %v2168_v49, %v4774_v2  ;;  %v2174_v9 = vmul.f32 %v2170_v44, %v4774_v2  ;;  %2421 = vmatpush.bf16.msrb.mxu3 %v3407_v35  ;;  %v3395_v2 = vor.u32 %v3645_v60, %v3394_v51 }
 0x511   :  { %v2176_v14 = vadd.f32 %v2172_v0, %v4780_v19  ;;  %v2178_v17 = vadd.f32 %v2174_v9, %v4780_v19  ;;  %2403 = vmatpush.bf16.msrb.mxu2 %v3395_v2  ;;  %v3386_v19 = vld [vmem:[#allocation7 + $0x10] sm:$0xf] }
 0x512   :  { %v3387_v16 = vor.u32 %v3643_v6, %v3386_v19 }
 0x513   :  { %v2182_v21 = vmax.f32 %v2178_v17, 0.0  ;;  %v2180_v27 = vmax.f32 %v2176_v14, 0.0  ;;  %2422 = vmatpush.bf16.msrb.mxu3 %v3399_v36 }
 0x515   :  { %v2184_v39 = vpack.c.bf16 %v2182_v21, %v2180_v27  ;;  %2404 = vmatpush.bf16.msrb.mxu2 %v3387_v16 }
 0x517   :  { %2207 = vmatmul.bf16.vlgmr.msrb.gmra.mxu1 %v2184_v39  ;;  %2423 = vmatpush.bf16.msrb.mxu3 %v3391_v5 }
 0x519   :  { %2405 = vmatpush.bf16.msrb.mxu2 %v3379_v23 }
 0x51b   :  { %2424 = vmatpush.bf16.msrb.mxu3 %v3383_v7 }
 0x54f   :  { %v2054_v33 = vpop.f32.mrf.mxu1 }
 0x550   :  { %v2064_v38 = vadd.f32 %v2054_v33, %v1168_v40 }
 0x552   :  { %v2262_v42 = vadd.f32 %v2258_v24, %v2064_v38 }
 0x557   :  { %v2056_v53 = vpop.f32.mrf.mxu1 }
 0x558   :  { %v2065_v28 = vadd.f32 %v2056_v53, %v1169_v57 }
 0x55a   :  { %v2263_v62 = vadd.f32 %v2259_v50, %v2065_v28 }
 0x55c   :  { %v2316_v1 = vpack.c.bf16 %v2263_v62, %v2262_v42 }
 0x55e   :  { %2406 = vmatmul.bf16.vlgmr.msrb.gmra.mxu2 %v2316_v1  ;;  %2425 = vmatmul.bf16.vlgmr.msrb.gmra.mxu3 %v2316_v1 }
 0x55f   :  { %v2059_v4 = vpop.f32.mrf.mxu1 }
 0x560   :  { %v2066_v11 = vadd.f32 %v2059_v4, %v1170_v55 }
 0x562   :  { %v2264_v12 = vadd.f32 %v2260_v48, %v2066_v11 }
 0x567   :  { %v2061_v37 = vpop.f32.mrf.mxu1 }
 0x568   :  { %v2067_v63 = vadd.f32 %v2061_v37, %v1171_v34 }
 0x56a   :  { %v2265_v45 = vadd.f32 %v2261_v20, %v2067_v63 }
 0x56c   :  { %v2317_v49 = vpack.c.bf16 %v2265_v45, %v2264_v12 }
 0x56e   :  { %2411 = vmatmul.bf16.gmra.mxu2 %v2317_v49  ;;  %2430 = vmatmul.bf16.gmra.mxu3 %v2317_v49 }
 0x586   :  { %v2194_v44 = vpop.f32.mrf.mxu0 }
 0x58e   :  { %v2196_v0 = vpop.f32.mrf.mxu0 }
 0x594   :  { %v2208_v58 = vpop.f32.mrf.mxu1 }
 0x595   :  { %v2209_v17 = vadd.f32 %v2208_v58, %v2194_v44  ;;  %v3663_v44 = vld [vmem:[#allocation10 + $0x38] sm:$0xff] }
 0x596   :  { %v3671_v58 = vld [vmem:[#allocation10 + $0x78] sm:$0xff]  ;;  %2659 = vmatpush.bf16.msra.mxu0 %v3663_v44 }
 0x597   :  { %2678 = vmatpush.bf16.msra.mxu1 %v3671_v58 }
 0x59c   :  { %v2210_v9 = vpop.f32.mrf.mxu1 }
 0x59d   :  { %v2211_v14 = vadd.f32 %v2210_v9, %v2196_v0 }
 0x59f   :  { %v2213_v21 = vsel %vm1656_vm4, %v2211_v14, 0.0 }
 0x5a0   :  { %v2214_v27 = vadd.f32 %v2213_v21, %v2209_v17  ;;  %v3662_v21 = vld [vmem:[#allocation10 + $0x30] sm:$0xff] }
 0x5a1   :  { %2660 = vmatpush.bf16.msra.mxu0 %v3662_v21 }
 0x5a2   :  { %v2215_v39 = vrot.slane %v2214_v27, 4 }
 0x5a4   :  { %v2216_v41 = vadd.f32 %v2215_v39, %v2214_v27  ;;  %v3670_v27 = vld [vmem:[#allocation10 + $0x70] sm:$0xff] }
 0x5a5   :  { %2679 = vmatpush.bf16.msra.mxu1 %v3670_v27 }
 0x5a6   :  { %v2217_v18 = vrot.slane %v2216_v41, 2 }
 0x5a8   :  { %v2218_v26 = vadd.f32 %v2217_v18, %v2216_v41 }
 0x5aa   :  { %v2219_v61 = vrot.slane %v2218_v26, 1 }
 0x5ac   :  { %v2220_v46 = vadd.f32 %v2219_v61, %v2218_v26  ;;  %v3661_v61 = vld [vmem:[#allocation10 + $0x28] sm:$0xff] }
 0x5ad   :  { %2661 = vmatpush.bf16.msra.mxu0 %v3661_v61 }
 0x5ae   :  { %v2221_v43 = vmul.f32 0.083333336, %v2220_v46  ;;  %v3669_v46 = vld [vmem:[#allocation10 + $0x68] sm:$0xff] }
 0x5af   :  { %2680 = vmatpush.bf16.msra.mxu1 %v3669_v46 }
 0x5b0   :  { %v2222_v35 = vsub.f32 %v2209_v17, %v2221_v43  ;;  %v2223_v51 = vsub.f32 %v2211_v14, %v2221_v43 }
 0x5b2   :  { %v2224_v60 = vmul.f32 %v2222_v35, %v2222_v35  ;;  %v2225_v32 = vmul.f32 %v2223_v51, %v2223_v51 }
 0x5b4   :  { %v2226_v2 = vsel %vm1656_vm4, %v2225_v32, 0.0 }
 0x5b5   :  { %v2227_v31 = vadd.f32 %v2226_v2, %v2224_v60 }
 0x5b7   :  { %v2228_v36 = vrot.slane %v2227_v31, 4 }
 0x5b9   :  { %v2229_v19 = vadd.f32 %v2228_v36, %v2227_v31 }
 0x5bb   :  { %v2230_v6 = vrot.slane %v2229_v19, 2 }
 0x5bd   :  { %v2231_v25 = vadd.f32 %v2230_v6, %v2229_v19  ;;  %v3660_v6 = vld [vmem:[#allocation10 + $0x20] sm:$0xff] }
 0x5be   :  { %2662 = vmatpush.bf16.msra.mxu0 %v3660_v6 }
 0x5bf   :  { %v2232_v16 = vrot.slane %v2231_v25, 1 }
 0x5c1   :  { %v2233_v10 = vadd.f32 %v2232_v16, %v2231_v25  ;;  %v3668_v25 = vld [vmem:[#allocation10 + $0x60] sm:$0xff] }
 0x5c2   :  { %2681 = vmatpush.bf16.msra.mxu1 %v3668_v25 }
 0x5c3   :  { %v2234_v5 = vmul.f32 0.083333336, %v2233_v10 }
 0x5c5   :  { %v2235_v13 = vadd.f32 1e-05, %v2234_v5 }
 0x5c7   :  { %3709 = vrsqrt.f32 %v2235_v13  ;;  %vm2242_vm7 = vweird.f32 %v2235_v13 }
 0x5cd   :  { %v3710_v54 = vpop.eup %3709 }
 0x5ce   :  { %v2237_v15 = vmul.f32 %v3710_v54, %v2235_v13  ;;  %vm2243_vm6 = vweird.f32 %v3710_v54 }
 0x5cf   :  { %vm2244_vm8 = vmor %vm2242_vm7, %vm2243_vm6 }
 0x5d0   :  { %v2238_v23 = vmul.f32 %v3710_v54, %v2237_v15 }
 0x5d2   :  { %v2239_v52 = vmul.f32 0.5, %v2238_v23 }
 0x5d4   :  { %v2240_v7 = vsub.f32 1.5, %v2239_v52 }
 0x5d6   :  { %v2241_v29 = vmul.f32 %v3710_v54, %v2240_v7 }
 0x5d8   :  { %v2245_v3 = vsel %vm2244_vm8, %v3710_v54, %v2241_v29  ;;  %v3659_v29 = vld [vmem:[#allocation10 + $0x18] sm:$0xff] }
 0x5d9   :  { %v2246_v59 = vmul.f32 %v2245_v3, %v2222_v35  ;;  %v2247_v24 = vmul.f32 %v2245_v3, %v2223_v51  ;;  %v3667_v3 = vld [vmem:[#allocation10 + $0x58] sm:$0xff]  ;;  %2663 = vmatpush.bf16.msra.mxu0 %v3659_v29 }
 0x5da   :  { %2682 = vmatpush.bf16.msra.mxu1 %v3667_v3 }
 0x5db   :  { %v2248_v40 = vmul.f32 %v2246_v59, %v4842_v22  ;;  %v2249_v33 = vmul.f32 %v2247_v24, %v4842_v22 }
 0x5dd   :  { %v2250_v38 = vadd.f32 %v2248_v40, %v4844_v8  ;;  %v2251_v42 = vadd.f32 %v2249_v33, %v4844_v8 }
 0x5df   :  { %v2252_v47 = vmax.f32 %v2250_v38, 0.0  ;;  %v2253_v50 = vmax.f32 %v2251_v42, 0.0  ;;  %v3658_v42 = vld [vmem:[#allocation10 + $0x10] sm:$0xff] }
 0x5e0   :  { %2664 = vmatpush.bf16.msra.mxu0 %v3658_v42 }
 0x5e1   :  { %v2407_v57 = vpop.f32.mrf.mxu2  ;;  %v2426_v53 = vpop.f32.mrf.mxu3  ;;  %2254 = vst [vmem:[#allocation33] sm:$0xff] %v2252_v47  ;;  %v3666_v47 = vld [vmem:[#allocation10 + $0x50] sm:$0xff] }
 0x5e2   :  { %2255 = vst [vmem:[#allocation33 + $0x8] sm:$0xf] %v2253_v50  ;;  %2683 = vmatpush.bf16.msra.mxu1 %v3666_v47 }
 0x5e3   :  { %2796 = dma.vmem_to_hbm [thread:$0]  %s2789_s4, 256, %s2791_s7, [#allocation32], %s5071_s10, %s5071_s10, %s4215_s0  }
 0x5e9   :  { %v2409_v28 = vpop.f32.mrf.mxu2  ;;  %v2428_v62 = vpop.f32.mrf.mxu3 }
 0x5ea   :  { %v2436_v48 = vadd.f32 %v2409_v28, %v2407_v57  ;;  %v2445_v55 = vadd.f32 %v2428_v62, %v2426_v53 }
 0x5f1   :  { %v2412_v1 = vpop.f32.mrf.mxu2  ;;  %v2431_v30 = vpop.f32.mrf.mxu3 }
 0x5f2   :  { %v2437_v4 = vadd.f32 %v2436_v48, %v2412_v1  ;;  %v2446_v11 = vadd.f32 %v2445_v55, %v2431_v30  ;;  %v3656_v55 = vld [vmem:[#allocation10] sm:$0xff] }
 0x5f9   :  { %v2414_v12 = vpop.f32.mrf.mxu2  ;;  %v2433_v22 = vpop.f32.mrf.mxu3 }
 0x5fa   :  { %v2438_v56 = vadd.f32 %v2437_v4, %v2414_v12  ;;  %v2447_v20 = vadd.f32 %v2446_v11, %v2433_v22  ;;  %v3664_v11 = vld [vmem:[#allocation10 + $0x40] sm:$0xff] }
 0x5fc   :  { %v2439_v34 = vrot.slane %v2438_v56, 4  ;;  %v2448_v8 = vrot.slane %v2447_v20, 4 }
 0x5fe   :  { %v2440_v37 = vadd.f32 %v2439_v34, %v2438_v56  ;;  %v2449_v63 = vadd.f32 %v2448_v8, %v2447_v20 }
 0x600   :  { %v2441_v45 = vrot.slane %v2440_v37, 2  ;;  %v2450_v49 = vrot.slane %v2449_v63, 2 }
 0x602   :  { %v2442_v0 = vadd.f32 %v2441_v45, %v2440_v37  ;;  %v2451_v9 = vadd.f32 %v2450_v49, %v2449_v63 }
 0x604   :  { %v2443_v14 = vrot.slane %v2442_v0, 1  ;;  %v2452_v17 = vrot.slane %v2451_v9, 1 }
 0x606   :  { %v2444_v39 = vadd.f32 %v2443_v14, %v2442_v0  ;;  %v2453_v41 = vadd.f32 %v2452_v17, %v2451_v9  ;;  %v2282_v0 = vld [vmem:[#allocation9] sm:$0xf] }
 0x607   :  { %v2523_v21 = vperm.slane %v2282_v0, 0  ;;  %v2538_v46 = vperm.slane %v2282_v0, 3 }
 0x608   :  { %v2454_v18 = vmul.f32 0.03125, %v2444_v39  ;;  %v2455_v26 = vmul.f32 0.03125, %v2453_v41  ;;  %v2524_v41 = vperm.slane %v2282_v0, 2 }
 0x60a   :  { %v4938_v43 = vsub.f32 %v2407_v57, %v2454_v18  ;;  %v4940_v35 = vsub.f32 %v2409_v28, %v2454_v18  ;;  %v4942_v51 = vsub.f32 %v2412_v1, %v2454_v18  ;;  %v4944_v60 = vsub.f32 %v2426_v53, %v2455_v26  ;;  %v3665_v1 = vld [vmem:[#allocation10 + $0x48] sm:$0xff] }
 0x60b   :  { %v4946_v32 = vsub.f32 %v2428_v62, %v2455_v26  ;;  %v4948_v2 = vsub.f32 %v2431_v30, %v2455_v26  ;;  %v4950_v31 = vsub.f32 %v2414_v12, %v2454_v18  ;;  %v4956_v16 = vsub.f32 %v2433_v22, %v2455_v26  ;;  %v3657_v62 = vld [vmem:[#allocation10 + $0x8] sm:$0xff]  ;;  %2684 = vmatpush.bf16.msra.mxu1 %v3665_v1 }
 0x60c   :  { %v2464_v36 = vmul.f32 %v4938_v43, %v4938_v43  ;;  %v2466_v19 = vmul.f32 %v4940_v35, %v4940_v35  ;;  %v2465_v10 = vmul.f32 %v4944_v60, %v4944_v60  ;;  %v2468_v13 = vmul.f32 %v4942_v51, %v4942_v51  ;;  %2665 = vmatpush.bf16.msra.mxu0 %v3657_v62 }
 0x60d   :  { %v2467_v5 = vmul.f32 %v4946_v32, %v4946_v32  ;;  %v2469_v15 = vmul.f32 %v4948_v2, %v4948_v2  ;;  %v2470_v52 = vmul.f32 %v4950_v31, %v4950_v31  ;;  %v2471_v59 = vmul.f32 %v4956_v16, %v4956_v16 }
 0x60e   :  { %v2472_v54 = vadd.f32 %v2466_v19, %v2464_v36  ;;  %v2537_v26 = vperm.slane %v2282_v0, 1  ;;  %v2527_v36 = vperm.slane %v2523_v21, 0  ;;  %v2528_v25 = vperm.slane %v2524_v41, 0 }
 0x60f   :  { %v2481_v23 = vadd.f32 %v2467_v5, %v2465_v10  ;;  %2685 = vmatpush.bf16.msra.mxu1 %v3664_v11 }
 0x610   :  { %v2473_v7 = vadd.f32 %v2472_v54, %v2468_v13  ;;  %2666 = vmatpush.bf16.msra.mxu0 %v3656_v55  ;;  %v2541_v54 = vperm.slane %v2537_v26, 1 }
 0x611   :  { %v2482_v24 = vadd.f32 %v2481_v23, %v2469_v15 }
 0x612   :  { %v2474_v40 = vadd.f32 %v2473_v7, %v2470_v52  ;;  %v2542_v52 = vperm.slane %v2538_v46, 1 }
 0x613   :  { %v2483_v33 = vadd.f32 %v2482_v24, %v2471_v59 }
 0x614   :  { %v2475_v38 = vrot.slane %v2474_v40, 4 }
 0x615   :  { %v2484_v50 = vrot.slane %v2483_v33, 4 }
 0x616   :  { %v2476_v57 = vadd.f32 %v2475_v38, %v2474_v40 }
 0x617   :  { %v2485_v53 = vadd.f32 %v2484_v50, %v2483_v33 }
 0x618   :  { %v2477_v28 = vrot.slane %v2476_v57, 2 }
 0x619   :  { %v2486_v30 = vrot.slane %v2485_v53, 2 }
 0x61a   :  { %v2478_v48 = vadd.f32 %v2477_v28, %v2476_v57 }
 0x61b   :  { %v2487_v4 = vadd.f32 %v2486_v30, %v2485_v53 }
 0x61c   :  { %v2479_v12 = vrot.slane %v2478_v48, 1 }
 0x61d   :  { %v2488_v22 = vrot.slane %v2487_v4, 1 }
 0x61e   :  { %v2480_v56 = vadd.f32 %v2479_v12, %v2478_v48 }
 0x61f   :  { %v2489_v20 = vadd.f32 %v2488_v22, %v2487_v4 }
 0x620   :  { %v2490_v34 = vmul.f32 0.03125, %v2480_v56 }
 0x621   :  { %v2491_v8 = vmul.f32 0.03125, %v2489_v20 }
 0x622   :  { %v2492_v37 = vadd.f32 1e-05, %v2490_v34 }
 0x623   :  { %v2493_v63 = vadd.f32 1e-05, %v2491_v8 }
 0x624   :  { %3711 = vrsqrt.f32 %v2492_v37  ;;  %vm2500_vm10 = vweird.f32 %v2492_v37 }
 0x625   :  { %3713 = vrsqrt.f32 %v2493_v63  ;;  %vm2510_vm12 = vweird.f32 %v2493_v63 }
 0x62a   :  { %v3712_v45 = vpop.eup %3711 }
 0x62b   :  { %v3714_v49 = vpop.eup %3713  ;;  %v2495_v44 = vmul.f32 %v3712_v45, %v2492_v37  ;;  %vm2501_vm4 = vweird.f32 %v3712_v45 }
 0x62c   :  { %v2505_v58 = vmul.f32 %v3714_v49, %v2493_v63  ;;  %vm2511_vm9 = vweird.f32 %v3714_v49  ;;  %vm2502_vm11 = vmor %vm2500_vm10, %vm2501_vm4 }
 0x62d   :  { %v2496_v9 = vmul.f32 %v3712_v45, %v2495_v44  ;;  %vm2512_vm13 = vmor %vm2510_vm12, %vm2511_vm9 }
 0x62e   :  { %v2506_v14 = vmul.f32 %v3714_v49, %v2505_v58 }
 0x62f   :  { %v2497_v17 = vmul.f32 0.5, %v2496_v9 }
 0x630   :  { %v2507_v27 = vmul.f32 0.5, %v2506_v14 }
 0x631   :  { %v2498_v39 = vsub.f32 1.5, %v2497_v17 }
 0x632   :  { %v2508_v18 = vsub.f32 1.5, %v2507_v27 }
 0x633   :  { %v2499_v61 = vmul.f32 %v3712_v45, %v2498_v39 }
 0x634   :  { %v2509_v19 = vmul.f32 %v3714_v49, %v2508_v18 }
 0x635   :  { %v2503_v6 = vsel %vm2502_vm11, %v3712_v45, %v2499_v61 }
 0x636   :  { %v2514_v10 = vmul.f32 %v2503_v6, %v4938_v43  ;;  %v2516_v5 = vmul.f32 %v2503_v6, %v4940_v35  ;;  %v2513_v13 = vsel %vm2512_vm13, %v3714_v49, %v2509_v19  ;;  %v2520_v35 = vmul.f32 %v2503_v6, %v4950_v31 }
 0x637   :  { %v2515_v15 = vmul.f32 %v2513_v13, %v4944_v60  ;;  %v2517_v23 = vmul.f32 %v2513_v13, %v4946_v32  ;;  %v2518_v60 = vmul.f32 %v2503_v6, %v4942_v51  ;;  %v2521_v32 = vmul.f32 %v2513_v13, %v4956_v16 }
 0x638   :  { %v2529_v7 = vmul.f32 %v2527_v36, %v2514_v10  ;;  %v2531_v29 = vmul.f32 %v2527_v36, %v2516_v5  ;;  %v2519_v28 = vmul.f32 %v2513_v13, %v4948_v2  ;;  %v2535_v62 = vmul.f32 %v2527_v36, %v2520_v35 }
 0x639   :  { %v2530_v3 = vmul.f32 %v2528_v25, %v2515_v15  ;;  %v2532_v59 = vmul.f32 %v2528_v25, %v2517_v23  ;;  %v2533_v1 = vmul.f32 %v2527_v36, %v2518_v60  ;;  %v2536_v30 = vmul.f32 %v2528_v25, %v2521_v32 }
 0x63a   :  { %v2543_v24 = vadd.f32 %v2541_v54, %v2529_v7  ;;  %v2545_v40 = vadd.f32 %v2541_v54, %v2531_v29  ;;  %v2534_v48 = vmul.f32 %v2528_v25, %v2519_v28  ;;  %v2549_v4 = vadd.f32 %v2541_v54, %v2535_v62 }
 0x63b   :  { %v2544_v33 = vadd.f32 %v2542_v52, %v2530_v3  ;;  %v2546_v38 = vadd.f32 %v2542_v52, %v2532_v59  ;;  %v2547_v55 = vadd.f32 %v2541_v54, %v2533_v1  ;;  %v2550_v12 = vadd.f32 %v2542_v52, %v2536_v30 }
 0x63c   :  { %v2551_v42 = vmax.f32 %v2543_v24, 0.0  ;;  %v2553_v47 = vmax.f32 %v2545_v40, 0.0  ;;  %v2548_v11 = vadd.f32 %v2542_v52, %v2534_v48  ;;  %v2557_v31 = vmax.f32 %v2549_v4, 0.0 }
 0x63d   :  { %v2552_v43 = vmax.f32 %v2544_v33, 0.0  ;;  %v2554_v50 = vmax.f32 %v2546_v38, 0.0  ;;  %v2555_v22 = vmax.f32 %v2547_v55, 0.0  ;;  %v2558_v20 = vmax.f32 %v2550_v12, 0.0 }
 0x63e   :  { %v2559_v57 = vpack.c.bf16 %v2553_v47, %v2551_v42  ;;  %v2556_v56 = vmax.f32 %v2548_v11, 0.0 }
 0x63f   :  { %v2560_v53 = vpack.c.bf16 %v2554_v50, %v2552_v43  ;;  %v2561_v51 = vpack.c.bf16 %v2557_v31, %v2555_v22 }
 0x640   :  { %2667 = vmatmul.bf16.vlgmr.msra.gmra.mxu0 %v2559_v57  ;;  %v2562_v34 = vpack.c.bf16 %v2558_v20, %v2556_v56  ;;  %v2315_v57 = vld [vmem:[#allocation12] sm:$0x3] }
 0x641   :  { %2686 = vmatmul.bf16.vlgmr.msra.gmra.mxu1 %v2560_v53  ;;  %v2740_v53 = vperm.slane %v2315_v57, 0  ;;  %v2745_v62 = vperm.slane %v2315_v57, 1 }
 0x650   :  { %2672 = vmatmul.bf16.gmra.mxu0 %v2561_v51 }
 0x651   :  { %2691 = vmatmul.bf16.gmra.mxu1 %v2562_v34 }
 0x6bd   :  { %v2668_v2 = vpop.f32.mrf.mxu0 }
 0x6be   :  { %v2687_v16 = vpop.f32.mrf.mxu1 }
 0x6bf   :  { %v2688_v44 = vadd.f32 %v2687_v16, %v2668_v2 }
 0x6c5   :  { %v2670_v8 = vpop.f32.mrf.mxu0 }
 0x6c6   :  { %v2689_v37 = vpop.f32.mrf.mxu1 }
 0x6c7   :  { %v2690_v49 = vadd.f32 %v2689_v37, %v2670_v8 }
 0x6c9   :  { %v2697_v0 = vadd.f32 %v2690_v49, %v2688_v44 }
 0x6cd   :  { %v2673_v63 = vpop.f32.mrf.mxu0 }
 0x6ce   :  { %v2692_v45 = vpop.f32.mrf.mxu1 }
 0x6cf   :  { %v2693_v58 = vadd.f32 %v2692_v45, %v2673_v63 }
 0x6d1   :  { %v2698_v17 = vadd.f32 %v2697_v0, %v2693_v58 }
 0x6d5   :  { %v2675_v9 = vpop.f32.mrf.mxu0 }
 0x6d6   :  { %v2694_v14 = vpop.f32.mrf.mxu1 }
 0x6d7   :  { %v2695_v21 = vadd.f32 %v2694_v14, %v2675_v9 }
 0x6d9   :  { %v2699_v27 = vadd.f32 %v2698_v17, %v2695_v21 }
 0x6db   :  { %v2700_v39 = vrot.slane %v2699_v27, 4 }
 0x6dd   :  { %v2701_v41 = vadd.f32 %v2700_v39, %v2699_v27 }
 0x6df   :  { %v2702_v18 = vrot.slane %v2701_v41, 2 }
 0x6e1   :  { %v2703_v26 = vadd.f32 %v2702_v18, %v2701_v41 }
 0x6e3   :  { %v2704_v61 = vrot.slane %v2703_v26, 1 }
 0x6e5   :  { %v2705_v46 = vadd.f32 %v2704_v61, %v2703_v26 }
 0x6e7   :  { %v2706_v36 = vmul.f32 0.03125, %v2705_v46 }
 0x6e9   :  { %v2707_v19 = vsub.f32 %v2688_v44, %v2706_v36  ;;  %v2708_v6 = vsub.f32 %v2690_v49, %v2706_v36  ;;  %v2709_v25 = vsub.f32 %v2693_v58, %v2706_v36  ;;  %v2710_v10 = vsub.f32 %v2695_v21, %v2706_v36 }
 0x6eb   :  { %v2711_v5 = vmul.f32 %v2707_v19, %v2707_v19  ;;  %v2712_v13 = vmul.f32 %v2708_v6, %v2708_v6  ;;  %v2713_v54 = vmul.f32 %v2709_v25, %v2709_v25  ;;  %v2714_v23 = vmul.f32 %v2710_v10, %v2710_v10 }
 0x6ed   :  { %v2715_v15 = vadd.f32 %v2712_v13, %v2711_v5 }
 0x6ef   :  { %v2716_v52 = vadd.f32 %v2715_v15, %v2713_v54 }
 0x6f1   :  { %v2717_v7 = vadd.f32 %v2716_v52, %v2714_v23 }
 0x6f3   :  { %v2718_v29 = vrot.slane %v2717_v7, 4 }
 0x6f5   :  { %v2719_v3 = vadd.f32 %v2718_v29, %v2717_v7 }
 0x6f7   :  { %v2720_v59 = vrot.slane %v2719_v3, 2 }
 0x6f9   :  { %v2721_v24 = vadd.f32 %v2720_v59, %v2719_v3 }
 0x6fb   :  { %v2722_v40 = vrot.slane %v2721_v24, 1 }
 0x6fd   :  { %v2723_v33 = vadd.f32 %v2722_v40, %v2721_v24 }
 0x6ff   :  { %v2724_v38 = vmul.f32 0.03125, %v2723_v33 }
 0x701   :  { %v2725_v42 = vadd.f32 1e-05, %v2724_v38 }
 0x703   :  { %3715 = vrsqrt.f32 %v2725_v42  ;;  %vm2732_vm15 = vweird.f32 %v2725_v42 }
 0x709   :  { %v3716_v47 = vpop.eup %3715 }
 0x70a   :  { %v2727_v43 = vmul.f32 %v3716_v47, %v2725_v42  ;;  %vm2733_vm14 = vweird.f32 %v3716_v47 }
 0x70b   :  { %vm2734_vm0 = vmor %vm2732_vm15, %vm2733_vm14 }
 0x70c   :  { %v2728_v50 = vmul.f32 %v3716_v47, %v2727_v43 }
 0x70e   :  { %v2729_v35 = vmul.f32 0.5, %v2728_v50 }
 0x710   :  { %v2730_v60 = vsub.f32 1.5, %v2729_v35 }
 0x712   :  { %v2731_v32 = vmul.f32 %v3716_v47, %v2730_v60 }
 0x714   :  { %v2735_v28 = vsel %vm2734_vm0, %v3716_v47, %v2731_v32 }
 0x715   :  { %v2736_v1 = vmul.f32 %v2735_v28, %v2707_v19  ;;  %v2737_v30 = vmul.f32 %v2735_v28, %v2708_v6  ;;  %v2738_v48 = vmul.f32 %v2735_v28, %v2709_v25  ;;  %v2739_v55 = vmul.f32 %v2735_v28, %v2710_v10 }
 0x717   :  { %v2744_v4 = vmul.f32 %v2740_v53, %v2739_v55  ;;  %v2741_v11 = vmul.f32 %v2740_v53, %v2736_v1  ;;  %v2742_v12 = vmul.f32 %v2740_v53, %v2737_v30  ;;  %v2743_v22 = vmul.f32 %v2740_v53, %v2738_v48 }
 0x719   :  { %v2749_v31 = vadd.f32 %v2745_v62, %v2744_v4  ;;  %v2746_v56 = vadd.f32 %v2745_v62, %v2741_v11  ;;  %v2747_v20 = vadd.f32 %v2745_v62, %v2742_v12  ;;  %v2748_v51 = vadd.f32 %v2745_v62, %v2743_v22 }
 0x71b   :  { %v2750_v34 = vmax.f32 %v2746_v56, 0.0  ;;  %v2751_v2 = vmax.f32 %v2747_v20, 0.0  ;;  %v2752_v16 = vmax.f32 %v2748_v51, 0.0  ;;  %v2753_v8 = vmax.f32 %v2749_v31, 0.0 }
 0x71d   :  { %2754 = vst [vmem:[#allocation30] sm:$0xff] %v2750_v34 }
 0x71e   :  { %2755 = vst [vmem:[#allocation30 + $0x8] sm:$0xff] %v2751_v2 }
 0x71f   :  { %2756 = vst [vmem:[#allocation30 + $0x10] sm:$0xff] %v2752_v16 }
 0x720   :  { %2757 = vst [vmem:[#allocation30 + $0x18] sm:$0xff] %v2753_v8 }
 0x721   :  { %2770 = dma.vmem_to_hbm [thread:$0]  %s2763_s30, 512, %s2765_s1, [#allocation4], %s5071_s10, %s5071_s10, %s4215_s0  }
 0x722   :  { %4209 = dma.done.wait [#allocation4], 512  }
 0x723   :  { %4210 = vsyncadd [#allocation4], 4294966784 }
 0x724   :  { %4211 = dma.done.wait [#allocation32], 512  }
 0x725   :  { %4212 = vsyncadd [#allocation32], 4294966784 }
 0x726   :  { %2809 = vsyncpa [#allocation3], 1 }
 0x727   :  { %2810 = vsyncpa [#allocation8], 1 }
 0x728   :  { %2811 = vsyncpa [#allocation11], 1 }
 0x729   :  { %2812 = vsyncpa [#allocation14], 1 }
 0x72a   :  { %2813 = vsyncpa [#allocation17], 1 }
 0x72b   :  { %2814 = vsyncpa [#allocation20], 1 }
 0x72c   :  { %2815 = vsyncpa [#allocation23], 1 }
 0x72d   :  { %2816 = vsyncpa [#allocation26], 1 }
 0x72e   :  { %2817 = vsyncpa [#allocation29], 1 }
 0x72f   :  { %2818 = vsyncpa [#allocation4], 1 }
 0x730   :  { %2819 = vsyncpa [#allocation32], 1 }
 0x731   :  { %2820 = vsyncpa [#allocation5], 1 }

</bundles_post_ra>
